<compile_context>
chip_gen: v7x
topology: tpu7x:2x2x1
jax: 0.10.0
libtpu: 0.0.40
codegen_flags: <defaults>
</compile_context>

<pallas_src>
import math
import numpy as np
import jax
import jax.numpy as jnp
from jax import lax
from jax.experimental import pallas as pl
from jax.experimental.pallas import tpu as pltpu

# ------------------------- module-consistent config -------------------------
D_MODEL = 32
D_STATE = 16
D_CONV = 4
EXPAND = 2
D_INNER = EXPAND * D_MODEL                 # 64
DI2 = 2 * D_INNER                          # 128: fwd | bwd lane-packed
DT_RANK = math.ceil(D_MODEL / 16)          # 2
BATCH = 2
SEQLEN = 8
BL = BATCH * SEQLEN                        # 16 rows (batch folded onto sublanes)
DT_MIN, DT_MAX, DT_INIT_FLOOR = 0.001, 0.1, 1e-4

# row offsets inside the packed (344, 128) f32 parameter slab
_OFF_WIN_F = 0                             # (32,128) in_proj fwd  (transposed)
_OFF_WIN_B = 32                            # (32,128) in_proj bwd  (transposed)
_OFF_WDT = 64                              # (128,128) block-diag folded dt_proj.x_proj
_OFF_WBC = 192                             # (64,128) block-diag B/C projection
_OFF_WOUT = 256                            # (64,128) block-diag out_proj
_OFF_A = 320                               # (16,128) A = -exp(A_log), transposed, packed
_OFF_TAIL = 336                            # (8,128): convw(4), convb, dtb, dvec, wp_row
_SLAB_ROWS = 344


def _softplus(x):
    return jnp.where(x > 20.0, x, jnp.log(1.0 + jnp.exp(x)))


def _silu(x):
    return x * (1.0 / (1.0 + jnp.exp(-x)))


# ------------------------- fused bidirectional kernel -------------------------
def _bimamba_kernel(hid_ref, w_ref, p_ref, out_ref):
    f32 = jnp.float32
    h2d = hid_ref[...]                                        # (BL, D_MODEL) rows = b*L+l

    # ---- packed parameters: static, tile-aligned slices of the single slab ----
    w_in_f = w_ref[_OFF_WIN_F:_OFF_WIN_F + D_MODEL, :]        # (32,128)
    w_in_b = w_ref[_OFF_WIN_B:_OFF_WIN_B + D_MODEL, :]        # (32,128)
    wdt = w_ref[_OFF_WDT:_OFF_WDT + DI2, :]                   # (128,128)
    wbc = w_ref[_OFF_WBC:_OFF_WBC + 4 * D_STATE, :]           # (64,128)
    wout = w_ref[_OFF_WOUT:_OFF_WOUT + 2 * D_MODEL, :]        # (64,128)
    a_pk = w_ref[_OFF_A:_OFF_A + D_STATE, :]                  # (16,128)
    tail = w_ref[_OFF_TAIL:_OFF_TAIL + 8, :]                  # (8,128) one aligned tile
    convw = tail[0:D_CONV, :]                                 # (4,128)
    convb = tail[D_CONV:D_CONV + 1, :]                        # (1,128)
    dtb = tail[D_CONV + 1:D_CONV + 2, :]                      # (1,128)
    dvec = tail[D_CONV + 2:D_CONV + 3, :]                     # (1,128)
    wp = tail[D_CONV + 3:D_CONV + 4, :]                       # (1,128)

    perm = p_ref[0:BL, :]                                     # (16,16) intra-batch flip
    shift = p_ref[BL:BL + D_CONV * BL, :]                     # (64,16) causal shift stack

    # ---- in_proj for both directions; bwd branch sees the flipped sequence ----
    xz_f = jnp.dot(h2d, w_in_f, preferred_element_type=f32)                    # (16,128)
    h2d_rev = jnp.dot(perm, h2d, preferred_element_type=f32)                   # (16,32)
    xz_b = jnp.dot(h2d_rev, w_in_b, preferred_element_type=f32)                # (16,128)
    x_pk = jnp.concatenate([xz_f[:, :D_INNER], xz_b[:, :D_INNER]], axis=1)     # (16,128)
    z_pk = jnp.concatenate([xz_f[:, D_INNER:], xz_b[:, D_INNER:]], axis=1)     # (16,128)

    # ---- depthwise causal conv1d + SiLU: one shift-matrix matmul + 4 VPU FMAs ----
    xs = jnp.dot(shift, x_pk, preferred_element_type=f32)     # (64,128): 4 shifted copies
    u = convb
    for s in range(D_CONV):
        u = u + convw[D_CONV - 1 - s:D_CONV - s, :] * xs[s * BL:(s + 1) * BL, :]
    u = _silu(u)                                              # (16,128)

    # ---- x_proj with dt_proj folded (one matmul) + B/C in state-major layout ----
    dtraw = jnp.dot(u, wdt, preferred_element_type=f32)       # (16,128)
    delta = _softplus(dtraw + dtb)                            # (16,128)
    du = delta * u
    bc_t = lax.dot_general(wbc, u, (((1,), (1,)), ((), ())),
                           preferred_element_type=f32)        # (64,16): Bf/Cf/Bb/Cb rows
    is_f = lax.broadcasted_iota(jnp.int32, (D_STATE, DI2), 1) < D_INNER

    # ---- hoisted per-step slabs: exp / broadcasts are OFF the serial chain ----
    dA, dBu = [], []
    for r in range(BL):
        dA.append(jnp.exp(delta[r:r + 1, :] * a_pk))                           # (16,128)
        bcol = jnp.where(is_f, bc_t[0:D_STATE, r:r + 1],
                         bc_t[2 * D_STATE:3 * D_STATE, r:r + 1])               # (16,128)
        dBu.append(bcol * du[r:r + 1, :])                                      # (16,128)

    # ---- selective scan: serial chain = 2 VPU ops / step, batches run in ILP ----
    hs = [None] * BL
    for b in range(BATCH):
        h = jnp.zeros((D_STATE, DI2), f32)
        for l in range(SEQLEN):
            r = b * SEQLEN + l
            h = dA[r] * h + dBu[r]
            hs[r] = h

    # ---- deferred C-contraction: independent sublane reductions after the scan ----
    ys = []
    for r in range(BL):
        ccol = jnp.where(is_f, bc_t[D_STATE:2 * D_STATE, r:r + 1],
                         bc_t[3 * D_STATE:4 * D_STATE, r:r + 1])               # (16,128)
        ys.append(jnp.sum(hs[r] * ccol, axis=0, keepdims=True))                # (1,128)
    y = jnp.concatenate(ys, axis=0)                           # (16,128)

    # ---- D skip, z gate, fused out_proj for both directions ----
    y = (y + dvec * u) * _silu(z_pk)                          # (16,128)
    xfb = lax.dot_general(y, wout, (((1,), (1,)), ((), ())),
                          preferred_element_type=f32)         # (16,64) = [xf | xb]

    # ---- bidirectional attention combine ----
    logit = jnp.sum(xfb * wp[:, :2 * D_MODEL], axis=1, keepdims=True) \
        + wp[0:1, 2 * D_MODEL:2 * D_MODEL + 1]                # (16,1)
    wgt = 1.0 / (1.0 + jnp.exp(-logit))
    out_ref[...] = wgt * xfb[:, :D_MODEL] + (1.0 - wgt) * xfb[:, D_MODEL:]


# ------------------------- parameter packing (offline) -------------------------
def _pack_direction(p):
    return dict(
        win_t=p["in_proj_w"].T,                                        # (32,128)
        convw_t=p["conv_w"].T,                                         # (4,64)
        convb=p["conv_b"].reshape(1, D_INNER),
        wdt_t=(p["dt_proj_w"] @ p["x_proj_w"][:DT_RANK, :]).T,         # (64,64)
        dtb=p["dt_proj_b"].reshape(1, D_INNER),
        a_t=(-jnp.exp(p["A_log"])).T,                                  # (16,64)
        w_bc=p["x_proj_w"][DT_RANK:, :],                               # (32,64)
        dvec=p["D"].reshape(1, D_INNER),
        wout=p["out_proj_w"],                                          # (32,64)
    )


def _pack_params(params):
    f = _pack_direction(params["fwd"])
    b = _pack_direction(params["bwd"])

    wdt_bd = jnp.zeros((DI2, DI2), jnp.float32)
    wdt_bd = wdt_bd.at[:D_INNER, :D_INNER].set(f["wdt_t"]).at[D_INNER:, D_INNER:].set(b["wdt_t"])
    wbc_bd = jnp.zeros((4 * D_STATE, DI2), jnp.float32)
    wbc_bd = wbc_bd.at[:2 * D_STATE, :D_INNER].set(f["w_bc"]).at[2 * D_STATE:, D_INNER:].set(b["w_bc"])
    wout_bd = jnp.zeros((2 * D_MODEL, DI2), jnp.float32)
    wout_bd = wout_bd.at[:D_MODEL, :D_INNER].set(f["wout"]).at[D_MODEL:, D_INNER:].set(b["wout"])

    a_pk = jnp.concatenate([f["a_t"], b["a_t"]], axis=1)               # (16,128)
    convw_pk = jnp.concatenate([f["convw_t"], b["convw_t"]], axis=1)   # (4,128)
    convb_pk = jnp.concatenate([f["convb"], b["convb"]], axis=1)       # (1,128)
    dtb_pk = jnp.concatenate([f["dtb"], b["dtb"]], axis=1)
    dvec_pk = jnp.concatenate([f["dvec"], b["dvec"]], axis=1)

    wp_row = jnp.zeros((1, DI2), jnp.float32)
    wp_row = wp_row.at[0, :2 * D_MODEL].set(params["wproj_w"][0])
    wp_row = wp_row.at[0, 2 * D_MODEL].set(params["wproj_b"][0])

    slab = jnp.concatenate([f["win_t"], b["win_t"], wdt_bd, wbc_bd, wout_bd, a_pk,
                            convw_pk, convb_pk, dtb_pk, dvec_pk, wp_row], axis=0)
    assert slab.shape == (_SLAB_ROWS, DI2)
    return slab


def _perm_shift_slab():
    perm = np.zeros((BL, BL), np.float32)
    for b in range(BATCH):
        for l in range(SEQLEN):
            perm[b * SEQLEN + l, b * SEQLEN + (SEQLEN - 1 - l)] = 1.0
    shift = np.zeros((D_CONV * BL, BL), np.float32)
    for s in range(D_CONV):
        for r in range(BL):
            if (r % SEQLEN) >= s:
                shift[s * BL + r, r - s] = 1.0
    return np.concatenate([perm, shift], axis=0)               # (80,16)


_PERM_SHIFT = _perm_shift_slab()


@jax.jit
def mamba_bidirectional_forward(params, hidden):
    B_, L_, D_ = hidden.shape
    assert (B_, L_, D_) == (BATCH, SEQLEN, D_MODEL)
    slab_w = _pack_params(params)                              # (344,128) f32, 1 DMA
    slab_p = jnp.asarray(_PERM_SHIFT)                          # (80,16)  f32, 1 DMA
    hid2d = hidden.reshape(B_ * L_, D_)

    out2d = pl.pallas_call(
        _bimamba_kernel,
        out_shape=jax.ShapeDtypeStruct((B_ * L_, D_), jnp.float32),
        in_specs=[pl.BlockSpec(memory_space=pltpu.MemorySpace.VMEM)] * 3,
        out_specs=pl.BlockSpec(memory_space=pltpu.MemorySpace.VMEM),
    )(hid2d, slab_w, slab_p)
    # TODO(synk): the stateful decode path (inference_params / step() with conv & ssm
    # caches) and dropout (Identity at p=0.0) are not implemented here.
    return out2d.reshape(B_, L_, D_)


# ------------------------- deterministic params -------------------------
def _init_mamba_params(key):
    ks = jax.random.split(key, 7)
    lim_in = 1.0 / math.sqrt(D_MODEL)
    in_proj_w = jax.random.uniform(ks[0], (2 * D_INNER, D_MODEL), jnp.float32, -lim_in, lim_in)
    lim_conv = 1.0 / math.sqrt(D_CONV)
    conv_w = jax.random.uniform(ks[1], (D_INNER, D_CONV), jnp.float32, -lim_conv, lim_conv)
    conv_b = jax.random.uniform(ks[2], (D_INNER,), jnp.float32, -lim_conv, lim_conv)
    lim_x = 1.0 / math.sqrt(D_INNER)
    x_proj_w = jax.random.uniform(ks[3], (DT_RANK + 2 * D_STATE, D_INNER), jnp.float32, -lim_x, lim_x)
    dt_init_std = DT_RANK ** (-0.5)
    dt_proj_w = jax.random.uniform(ks[4], (D_INNER, DT_RANK), jnp.float32, -dt_init_std, dt_init_std)
    dt = jnp.exp(jax.random.uniform(ks[5], (D_INNER,), jnp.float32)
                 * (math.log(DT_MAX) - math.log(DT_MIN)) + math.log(DT_MIN))
    dt = jnp.maximum(dt, DT_INIT_FLOOR)
    dt_proj_b = dt + jnp.log(-jnp.expm1(-dt))                  # inverse-softplus init
    A_log = jnp.log(jnp.broadcast_to(
        jnp.arange(1, D_STATE + 1, dtype=jnp.float32), (D_INNER, D_STATE)))
    D_param = jnp.ones((D_INNER,), jnp.float32)
    lim_out = 1.0 / math.sqrt(D_INNER)
    out_proj_w = jax.random.uniform(ks[6], (D_MODEL, D_INNER), jnp.float32, -lim_out, lim_out)
    return dict(in_proj_w=in_proj_w, conv_w=conv_w, conv_b=conv_b, x_proj_w=x_proj_w,
                dt_proj_w=dt_proj_w, dt_proj_b=dt_proj_b, A_log=A_log, D=D_param,
                out_proj_w=out_proj_w)


def init_params(key):
    kf, kb, kw = jax.random.split(key, 3)
    kw1, kw2 = jax.random.split(kw)
    lim_w = 1.0 / math.sqrt(2 * D_MODEL)
    return dict(
        fwd=_init_mamba_params(kf),
        bwd=_init_mamba_params(kb),
        wproj_w=jax.random.uniform(kw1, (1, 2 * D_MODEL), jnp.float32, -lim_w, lim_w),
        wproj_b=jax.random.uniform(kw2, (1,), jnp.float32, -lim_w, lim_w),
    )


# ------------------------- pure-JAX reference -------------------------
def _ref_mamba(params, hidden):
    B, L, _ = hidden.shape
    xz = jnp.einsum("bld,ed->ble", hidden, params["in_proj_w"], precision="highest")
    xz = xz.transpose(0, 2, 1)
    x, z = xz[:, :D_INNER, :], xz[:, D_INNER:, :]
    xp = jnp.pad(x, ((0, 0), (0, 0), (D_CONV - 1, 0)))
    conv = params["conv_b"][None, :, None]
    for k in range(D_CONV):
        conv = conv + params["conv_w"][None, :, k:k + 1] * xp[:, :, k:k + L]
    u = _silu(conv)
    x_dbl = jnp.einsum("bdl,ed->ble", u, params["x_proj_w"], precision="highest")
    dtr = x_dbl[..., :DT_RANK]
    Bt = x_dbl[..., DT_RANK:DT_RANK + D_STATE]
    Ct = x_dbl[..., DT_RANK + D_STATE:]
    dtraw = jnp.einsum("blr,dr->bdl", dtr, params["dt_proj_w"], precision="highest")
    delta = _softplus(dtraw + params["dt_proj_b"][None, :, None])
    A = -jnp.exp(params["A_log"])
    h = jnp.zeros((B, D_INNER, D_STATE), jnp.float32)
    ys = []
    for l in range(L):
        dl = delta[:, :, l]
        dA = jnp.exp(dl[..., None] * A[None])
        dBu = (dl * u[:, :, l])[..., None] * Bt[:, l][:, None, :]
        h = dA * h + dBu
        ys.append(jnp.sum(h * Ct[:, l][:, None, :], axis=-1))
    y = jnp.stack(ys, axis=-1)
    y = y + params["D"][None, :, None] * u
    y = y * _silu(z)
    return jnp.einsum("bdl,ed->ble", y, params["out_proj_w"], precision="highest")


def ref_forward(params, hidden):
    xf = _ref_mamba(params["fwd"], hidden)
    xb = _ref_mamba(params["bwd"], jnp.flip(hidden, axis=1))
    logits = jnp.concatenate([xf, xb], axis=-1) @ params["wproj_w"].T + params["wproj_b"]
    w = 1.0 / (1.0 + jnp.exp(-logits))
    return w * xf + (1.0 - w) * xb


if __name__ == "__main__":
    key = jax.random.PRNGKey(0)
    pkey, xkey = jax.random.split(key)
    params = init_params(pkey)
    hidden = jax.random.normal(xkey, (BATCH, SEQLEN, D_MODEL), jnp.float32)

    out = jax.block_until_ready(mamba_bidirectional_forward(params, hidden))
    ref = jax.block_until_ready(ref_forward(params, hidden))

    assert out.shape == (BATCH, SEQLEN, D_MODEL)
    assert np.allclose(np.asarray(out), np.asarray(ref), atol=1e-2, rtol=1e-2)
    print("KERNEL_OK")
</pallas_src>

<mosaic_0001>
module attributes {stable_mosaic.version = 11 : i64} {
  func.func @_bimamba_kernel(%arg0: memref<16x32xf32, #tpu.memory_space<vmem>>, %arg1: memref<344x128xf32, #tpu.memory_space<vmem>>, %arg2: memref<80x16xf32, #tpu.memory_space<vmem>>, %arg3: memref<16x32xf32, #tpu.memory_space<vmem>>) attributes {dimension_semantics = [], scalar_prefetch = 0 : i64, scratch_operands = 0 : i64, tpu.core_type = #tpu.core_type<tc>} {
    %c0 = arith.constant 0 : index
    %c0_0 = arith.constant 0 : index
    %0 = vector.load %arg0[%c0, %c0_0] : memref<16x32xf32, #tpu.memory_space<vmem>>, vector<16x32xf32>
    %c0_1 = arith.constant 0 : index
    %c0_2 = arith.constant 0 : index
    %1 = vector.load %arg1[%c0_1, %c0_2] : memref<344x128xf32, #tpu.memory_space<vmem>>, vector<32x128xf32>
    %c32 = arith.constant 32 : index
    %c0_3 = arith.constant 0 : index
    %2 = vector.load %arg1[%c32, %c0_3] : memref<344x128xf32, #tpu.memory_space<vmem>>, vector<32x128xf32>
    %c64 = arith.constant 64 : index
    %c0_4 = arith.constant 0 : index
    %3 = vector.load %arg1[%c64, %c0_4] : memref<344x128xf32, #tpu.memory_space<vmem>>, vector<128x128xf32>
    %c192 = arith.constant 192 : index
    %c0_5 = arith.constant 0 : index
    %4 = vector.load %arg1[%c192, %c0_5] : memref<344x128xf32, #tpu.memory_space<vmem>>, vector<64x128xf32>
    %c256 = arith.constant 256 : index
    %c0_6 = arith.constant 0 : index
    %5 = vector.load %arg1[%c256, %c0_6] : memref<344x128xf32, #tpu.memory_space<vmem>>, vector<64x128xf32>
    %c320 = arith.constant 320 : index
    %c0_7 = arith.constant 0 : index
    %6 = vector.load %arg1[%c320, %c0_7] : memref<344x128xf32, #tpu.memory_space<vmem>>, vector<16x128xf32>
    %c336 = arith.constant 336 : index
    %c0_8 = arith.constant 0 : index
    %7 = vector.load %arg1[%c336, %c0_8] : memref<344x128xf32, #tpu.memory_space<vmem>>, vector<8x128xf32>
    %8 = vector.extract_strided_slice %7 {offsets = [0, 0], sizes = [4, 128], strides = [1, 1]} : vector<8x128xf32> to vector<4x128xf32>
    %9 = vector.extract_strided_slice %7 {offsets = [4, 0], sizes = [1, 128], strides = [1, 1]} : vector<8x128xf32> to vector<1x128xf32>
    %10 = vector.extract_strided_slice %7 {offsets = [5, 0], sizes = [1, 128], strides = [1, 1]} : vector<8x128xf32> to vector<1x128xf32>
    %11 = vector.extract_strided_slice %7 {offsets = [6, 0], sizes = [1, 128], strides = [1, 1]} : vector<8x128xf32> to vector<1x128xf32>
    %12 = vector.extract_strided_slice %7 {offsets = [7, 0], sizes = [1, 128], strides = [1, 1]} : vector<8x128xf32> to vector<1x128xf32>
    %c0_9 = arith.constant 0 : index
    %c0_10 = arith.constant 0 : index
    %13 = vector.load %arg2[%c0_9, %c0_10] : memref<80x16xf32, #tpu.memory_space<vmem>>, vector<16x16xf32>
    %c16 = arith.constant 16 : index
    %c0_11 = arith.constant 0 : index
    %14 = vector.load %arg2[%c16, %c0_11] : memref<80x16xf32, #tpu.memory_space<vmem>>, vector<64x16xf32>
    %cst = arith.constant dense<0.000000e+00> : vector<16x128xf32>
    %15 = tpu.matmul %0, %1, %cst {dimension_numbers = #tpu.dot_dimension_numbers<[1], [0], [0], [1], [0, 0, 1, 1], [], []>} : vector<16x32xf32>, vector<32x128xf32>, vector<16x128xf32> -> vector<16x128xf32>
    %cst_12 = arith.constant dense<0.000000e+00> : vector<16x32xf32>
    %16 = tpu.matmul %13, %0, %cst_12 {dimension_numbers = #tpu.dot_dimension_numbers<[1], [0], [0], [1], [0, 0, 1, 1], [], []>} : vector<16x16xf32>, vector<16x32xf32>, vector<16x32xf32> -> vector<16x32xf32>
    %cst_13 = arith.constant dense<0.000000e+00> : vector<16x128xf32>
    %17 = tpu.matmul %16, %2, %cst_13 {dimension_numbers = #tpu.dot_dimension_numbers<[1], [0], [0], [1], [0, 0, 1, 1], [], []>} : vector<16x32xf32>, vector<32x128xf32>, vector<16x128xf32> -> vector<16x128xf32>
    %18 = vector.extract_strided_slice %15 {offsets = [0, 0], sizes = [16, 64], strides = [1, 1]} : vector<16x128xf32> to vector<16x64xf32>
    %19 = vector.extract_strided_slice %17 {offsets = [0, 0], sizes = [16, 64], strides = [1, 1]} : vector<16x128xf32> to vector<16x64xf32>
    %20 = tpu.concatenate %18, %19 in 1 : vector<16x64xf32>, vector<16x64xf32> -> vector<16x128xf32>
    %21 = vector.extract_strided_slice %15 {offsets = [0, 64], sizes = [16, 64], strides = [1, 1]} : vector<16x128xf32> to vector<16x64xf32>
    %22 = vector.extract_strided_slice %17 {offsets = [0, 64], sizes = [16, 64], strides = [1, 1]} : vector<16x128xf32> to vector<16x64xf32>
    %23 = tpu.concatenate %21, %22 in 1 : vector<16x64xf32>, vector<16x64xf32> -> vector<16x128xf32>
    %cst_14 = arith.constant dense<0.000000e+00> : vector<64x128xf32>
    %24 = tpu.matmul %14, %20, %cst_14 {dimension_numbers = #tpu.dot_dimension_numbers<[1], [0], [0], [1], [0, 0, 1, 1], [], []>} : vector<64x16xf32>, vector<16x128xf32>, vector<64x128xf32> -> vector<64x128xf32>
    %25 = vector.extract_strided_slice %8 {offsets = [3, 0], sizes = [1, 128], strides = [1, 1]} : vector<4x128xf32> to vector<1x128xf32>
    %26 = vector.extract_strided_slice %24 {offsets = [0, 0], sizes = [16, 128], strides = [1, 1]} : vector<64x128xf32> to vector<16x128xf32>
    %27 = vector.broadcast %25 : vector<1x128xf32> to vector<16x128xf32>
    %28 = arith.mulf %27, %26 : vector<16x128xf32>
    %29 = vector.broadcast %9 : vector<1x128xf32> to vector<16x128xf32>
    %30 = arith.addf %29, %28 : vector<16x128xf32>
    %31 = vector.extract_strided_slice %8 {offsets = [2, 0], sizes = [1, 128], strides = [1, 1]} : vector<4x128xf32> to vector<1x128xf32>
    %32 = vector.extract_strided_slice %24 {offsets = [16, 0], sizes = [16, 128], strides = [1, 1]} : vector<64x128xf32> to vector<16x128xf32>
    %33 = vector.broadcast %31 : vector<1x128xf32> to vector<16x128xf32>
    %34 = arith.mulf %33, %32 : vector<16x128xf32>
    %35 = arith.addf %30, %34 : vector<16x128xf32>
    %36 = vector.extract_strided_slice %8 {offsets = [1, 0], sizes = [1, 128], strides = [1, 1]} : vector<4x128xf32> to vector<1x128xf32>
    %37 = vector.extract_strided_slice %24 {offsets = [32, 0], sizes = [16, 128], strides = [1, 1]} : vector<64x128xf32> to vector<16x128xf32>
    %38 = vector.broadcast %36 : vector<1x128xf32> to vector<16x128xf32>
    %39 = arith.mulf %38, %37 : vector<16x128xf32>
    %40 = arith.addf %35, %39 : vector<16x128xf32>
    %41 = vector.extract_strided_slice %8 {offsets = [0, 0], sizes = [1, 128], strides = [1, 1]} : vector<4x128xf32> to vector<1x128xf32>
    %42 = vector.extract_strided_slice %24 {offsets = [48, 0], sizes = [16, 128], strides = [1, 1]} : vector<64x128xf32> to vector<16x128xf32>
    %43 = vector.broadcast %41 : vector<1x128xf32> to vector<16x128xf32>
    %44 = arith.mulf %43, %42 : vector<16x128xf32>
    %45 = arith.addf %40, %44 : vector<16x128xf32>
    %cst_15 = arith.constant 0.000000e+00 : f32
    %46 = vector.broadcast %cst_15 : f32 to vector<16x128xf32>
    %47 = arith.subf %46, %45 : vector<16x128xf32>
    %48 = math.exp %47 : vector<16x128xf32>
    %cst_16 = arith.constant 1.000000e+00 : f32
    %49 = vector.broadcast %cst_16 : f32 to vector<16x128xf32>
    %50 = arith.addf %49, %48 : vector<16x128xf32>
    %cst_17 = arith.constant 1.000000e+00 : f32
    %51 = vector.broadcast %cst_17 : f32 to vector<16x128xf32>
    %52 = arith.divf %51, %50 : vector<16x128xf32>
    %53 = arith.mulf %45, %52 : vector<16x128xf32>
    %cst_18 = arith.constant dense<0.000000e+00> : vector<16x128xf32>
    %54 = tpu.matmul %53, %3, %cst_18 {dimension_numbers = #tpu.dot_dimension_numbers<[1], [0], [0], [1], [0, 0, 1, 1], [], []>} : vector<16x128xf32>, vector<128x128xf32>, vector<16x128xf32> -> vector<16x128xf32>
    %55 = vector.broadcast %10 : vector<1x128xf32> to vector<16x128xf32>
    %56 = arith.addf %54, %55 : vector<16x128xf32>
    %cst_19 = arith.constant 2.000000e+01 : f32
    %57 = vector.broadcast %cst_19 : f32 to vector<16x128xf32>
    %58 = arith.cmpf ogt, %56, %57 : vector<16x128xf32>
    %59 = math.exp %56 : vector<16x128xf32>
    %cst_20 = arith.constant 1.000000e+00 : f32
    %60 = vector.broadcast %cst_20 : f32 to vector<16x128xf32>
    %61 = arith.addf %60, %59 : vector<16x128xf32>
    %62 = math.log %61 : vector<16x128xf32>
    %63 = arith.select %58, %56, %62 : vector<16x128xi1>, vector<16x128xf32>
    %64 = arith.mulf %63, %53 : vector<16x128xf32>
    %cst_21 = arith.constant dense<0.000000e+00> : vector<64x16xf32>
    %65 = tpu.matmul %4, %53, %cst_21 {dimension_numbers = #tpu.dot_dimension_numbers<[1], [1], [0], [0], [0, 0, 1, 0], [], []>} : vector<64x128xf32>, vector<16x128xf32>, vector<64x16xf32> -> vector<64x16xf32>
    %66 = tpu.iota {dimensions = array<i32: 1>} : vector<16x128xi32>
    %c64_i32 = arith.constant 64 : i32
    %67 = vector.broadcast %c64_i32 : i32 to vector<16x128xi32>
    %68 = arith.cmpi slt, %66, %67 : vector<16x128xi32>
    %69 = vector.extract_strided_slice %63 {offsets = [0, 0], sizes = [1, 128], strides = [1, 1]} : vector<16x128xf32> to vector<1x128xf32>
    %70 = vector.broadcast %69 : vector<1x128xf32> to vector<16x128xf32>
    %71 = arith.mulf %70, %6 : vector<16x128xf32>
    %72 = math.exp %71 : vector<16x128xf32>
    %73 = vector.extract_strided_slice %65 {offsets = [0, 0], sizes = [16, 1], strides = [1, 1]} : vector<64x16xf32> to vector<16x1xf32>
    %74 = vector.extract_strided_slice %65 {offsets = [32, 0], sizes = [16, 1], strides = [1, 1]} : vector<64x16xf32> to vector<16x1xf32>
    %75 = vector.shape_cast %73 : vector<16x1xf32> to vector<16x1xf32>
    %76 = vector.broadcast %75 : vector<16x1xf32> to vector<16x128xf32>
    %77 = vector.shape_cast %74 : vector<16x1xf32> to vector<16x1xf32>
    %78 = vector.broadcast %77 : vector<16x1xf32> to vector<16x128xf32>
    %79 = arith.select %68, %76, %78 : vector<16x128xi1>, vector<16x128xf32>
    %80 = vector.extract_strided_slice %64 {offsets = [0, 0], sizes = [1, 128], strides = [1, 1]} : vector<16x128xf32> to vector<1x128xf32>
    %81 = vector.broadcast %80 : vector<1x128xf32> to vector<16x128xf32>
    %82 = arith.mulf %79, %81 : vector<16x128xf32>
    %83 = vector.extract_strided_slice %63 {offsets = [1, 0], sizes = [1, 128], strides = [1, 1]} : vector<16x128xf32> to vector<1x128xf32>
    %84 = vector.broadcast %83 : vector<1x128xf32> to vector<16x128xf32>
    %85 = arith.mulf %84, %6 : vector<16x128xf32>
    %86 = math.exp %85 : vector<16x128xf32>
    %87 = vector.extract_strided_slice %65 {offsets = [0, 1], sizes = [16, 1], strides = [1, 1]} : vector<64x16xf32> to vector<16x1xf32>
    %88 = vector.extract_strided_slice %65 {offsets = [32, 1], sizes = [16, 1], strides = [1, 1]} : vector<64x16xf32> to vector<16x1xf32>
    %89 = vector.shape_cast %87 : vector<16x1xf32> to vector<16x1xf32>
    %90 = vector.broadcast %89 : vector<16x1xf32> to vector<16x128xf32>
    %91 = vector.shape_cast %88 : vector<16x1xf32> to vector<16x1xf32>
    %92 = vector.broadcast %91 : vector<16x1xf32> to vector<16x128xf32>
    %93 = arith.select %68, %90, %92 : vector<16x128xi1>, vector<16x128xf32>
    %94 = vector.extract_strided_slice %64 {offsets = [1, 0], sizes = [1, 128], strides = [1, 1]} : vector<16x128xf32> to vector<1x128xf32>
    %95 = vector.broadcast %94 : vector<1x128xf32> to vector<16x128xf32>
    %96 = arith.mulf %93, %95 : vector<16x128xf32>
    %97 = vector.extract_strided_slice %63 {offsets = [2, 0], sizes = [1, 128], strides = [1, 1]} : vector<16x128xf32> to vector<1x128xf32>
    %98 = vector.broadcast %97 : vector<1x128xf32> to vector<16x128xf32>
    %99 = arith.mulf %98, %6 : vector<16x128xf32>
    %100 = math.exp %99 : vector<16x128xf32>
    %101 = vector.extract_strided_slice %65 {offsets = [0, 2], sizes = [16, 1], strides = [1, 1]} : vector<64x16xf32> to vector<16x1xf32>
    %102 = vector.extract_strided_slice %65 {offsets = [32, 2], sizes = [16, 1], strides = [1, 1]} : vector<64x16xf32> to vector<16x1xf32>
    %103 = vector.shape_cast %101 : vector<16x1xf32> to vector<16x1xf32>
    %104 = vector.broadcast %103 : vector<16x1xf32> to vector<16x128xf32>
    %105 = vector.shape_cast %102 : vector<16x1xf32> to vector<16x1xf32>
    %106 = vector.broadcast %105 : vector<16x1xf32> to vector<16x128xf32>
    %107 = arith.select %68, %104, %106 : vector<16x128xi1>, vector<16x128xf32>
    %108 = vector.extract_strided_slice %64 {offsets = [2, 0], sizes = [1, 128], strides = [1, 1]} : vector<16x128xf32> to vector<1x128xf32>
    %109 = vector.broadcast %108 : vector<1x128xf32> to vector<16x128xf32>
    %110 = arith.mulf %107, %109 : vector<16x128xf32>
    %111 = vector.extract_strided_slice %63 {offsets = [3, 0], sizes = [1, 128], strides = [1, 1]} : vector<16x128xf32> to vector<1x128xf32>
    %112 = vector.broadcast %111 : vector<1x128xf32> to vector<16x128xf32>
    %113 = arith.mulf %112, %6 : vector<16x128xf32>
    %114 = math.exp %113 : vector<16x128xf32>
    %115 = vector.extract_strided_slice %65 {offsets = [0, 3], sizes = [16, 1], strides = [1, 1]} : vector<64x16xf32> to vector<16x1xf32>
    %116 = vector.extract_strided_slice %65 {offsets = [32, 3], sizes = [16, 1], strides = [1, 1]} : vector<64x16xf32> to vector<16x1xf32>
    %117 = vector.shape_cast %115 : vector<16x1xf32> to vector<16x1xf32>
    %118 = vector.broadcast %117 : vector<16x1xf32> to vector<16x128xf32>
    %119 = vector.shape_cast %116 : vector<16x1xf32> to vector<16x1xf32>
    %120 = vector.broadcast %119 : vector<16x1xf32> to vector<16x128xf32>
    %121 = arith.select %68, %118, %120 : vector<16x128xi1>, vector<16x128xf32>
    %122 = vector.extract_strided_slice %64 {offsets = [3, 0], sizes = [1, 128], strides = [1, 1]} : vector<16x128xf32> to vector<1x128xf32>
    %123 = vector.broadcast %122 : vector<1x128xf32> to vector<16x128xf32>
    %124 = arith.mulf %121, %123 : vector<16x128xf32>
    %125 = vector.extract_strided_slice %63 {offsets = [4, 0], sizes = [1, 128], strides = [1, 1]} : vector<16x128xf32> to vector<1x128xf32>
    %126 = vector.broadcast %125 : vector<1x128xf32> to vector<16x128xf32>
    %127 = arith.mulf %126, %6 : vector<16x128xf32>
    %128 = math.exp %127 : vector<16x128xf32>
    %129 = vector.extract_strided_slice %65 {offsets = [0, 4], sizes = [16, 1], strides = [1, 1]} : vector<64x16xf32> to vector<16x1xf32>
    %130 = vector.extract_strided_slice %65 {offsets = [32, 4], sizes = [16, 1], strides = [1, 1]} : vector<64x16xf32> to vector<16x1xf32>
    %131 = vector.shape_cast %129 : vector<16x1xf32> to vector<16x1xf32>
    %132 = vector.broadcast %131 : vector<16x1xf32> to vector<16x128xf32>
    %133 = vector.shape_cast %130 : vector<16x1xf32> to vector<16x1xf32>
    %134 = vector.broadcast %133 : vector<16x1xf32> to vector<16x128xf32>
    %135 = arith.select %68, %132, %134 : vector<16x128xi1>, vector<16x128xf32>
    %136 = vector.extract_strided_slice %64 {offsets = [4, 0], sizes = [1, 128], strides = [1, 1]} : vector<16x128xf32> to vector<1x128xf32>
    %137 = vector.broadcast %136 : vector<1x128xf32> to vector<16x128xf32>
    %138 = arith.mulf %135, %137 : vector<16x128xf32>
    %139 = vector.extract_strided_slice %63 {offsets = [5, 0], sizes = [1, 128], strides = [1, 1]} : vector<16x128xf32> to vector<1x128xf32>
    %140 = vector.broadcast %139 : vector<1x128xf32> to vector<16x128xf32>
    %141 = arith.mulf %140, %6 : vector<16x128xf32>
    %142 = math.exp %141 : vector<16x128xf32>
    %143 = vector.extract_strided_slice %65 {offsets = [0, 5], sizes = [16, 1], strides = [1, 1]} : vector<64x16xf32> to vector<16x1xf32>
    %144 = vector.extract_strided_slice %65 {offsets = [32, 5], sizes = [16, 1], strides = [1, 1]} : vector<64x16xf32> to vector<16x1xf32>
    %145 = vector.shape_cast %143 : vector<16x1xf32> to vector<16x1xf32>
    %146 = vector.broadcast %145 : vector<16x1xf32> to vector<16x128xf32>
    %147 = vector.shape_cast %144 : vector<16x1xf32> to vector<16x1xf32>
    %148 = vector.broadcast %147 : vector<16x1xf32> to vector<16x128xf32>
    %149 = arith.select %68, %146, %148 : vector<16x128xi1>, vector<16x128xf32>
    %150 = vector.extract_strided_slice %64 {offsets = [5, 0], sizes = [1, 128], strides = [1, 1]} : vector<16x128xf32> to vector<1x128xf32>
    %151 = vector.broadcast %150 : vector<1x128xf32> to vector<16x128xf32>
    %152 = arith.mulf %149, %151 : vector<16x128xf32>
    %153 = vector.extract_strided_slice %63 {offsets = [6, 0], sizes = [1, 128], strides = [1, 1]} : vector<16x128xf32> to vector<1x128xf32>
    %154 = vector.broadcast %153 : vector<1x128xf32> to vector<16x128xf32>
    %155 = arith.mulf %154, %6 : vector<16x128xf32>
    %156 = math.exp %155 : vector<16x128xf32>
    %157 = vector.extract_strided_slice %65 {offsets = [0, 6], sizes = [16, 1], strides = [1, 1]} : vector<64x16xf32> to vector<16x1xf32>
    %158 = vector.extract_strided_slice %65 {offsets = [32, 6], sizes = [16, 1], strides = [1, 1]} : vector<64x16xf32> to vector<16x1xf32>
    %159 = vector.shape_cast %157 : vector<16x1xf32> to vector<16x1xf32>
    %160 = vector.broadcast %159 : vector<16x1xf32> to vector<16x128xf32>
    %161 = vector.shape_cast %158 : vector<16x1xf32> to vector<16x1xf32>
    %162 = vector.broadcast %161 : vector<16x1xf32> to vector<16x128xf32>
    %163 = arith.select %68, %160, %162 : vector<16x128xi1>, vector<16x128xf32>
    %164 = vector.extract_strided_slice %64 {offsets = [6, 0], sizes = [1, 128], strides = [1, 1]} : vector<16x128xf32> to vector<1x128xf32>
    %165 = vector.broadcast %164 : vector<1x128xf32> to vector<16x128xf32>
    %166 = arith.mulf %163, %165 : vector<16x128xf32>
    %167 = vector.extract_strided_slice %63 {offsets = [7, 0], sizes = [1, 128], strides = [1, 1]} : vector<16x128xf32> to vector<1x128xf32>
    %168 = vector.broadcast %167 : vector<1x128xf32> to vector<16x128xf32>
    %169 = arith.mulf %168, %6 : vector<16x128xf32>
    %170 = math.exp %169 : vector<16x128xf32>
    %171 = vector.extract_strided_slice %65 {offsets = [0, 7], sizes = [16, 1], strides = [1, 1]} : vector<64x16xf32> to vector<16x1xf32>
    %172 = vector.extract_strided_slice %65 {offsets = [32, 7], sizes = [16, 1], strides = [1, 1]} : vector<64x16xf32> to vector<16x1xf32>
    %173 = vector.shape_cast %171 : vector<16x1xf32> to vector<16x1xf32>
    %174 = vector.broadcast %173 : vector<16x1xf32> to vector<16x128xf32>
    %175 = vector.shape_cast %172 : vector<16x1xf32> to vector<16x1xf32>
    %176 = vector.broadcast %175 : vector<16x1xf32> to vector<16x128xf32>
    %177 = arith.select %68, %174, %176 : vector<16x128xi1>, vector<16x128xf32>
    %178 = vector.extract_strided_slice %64 {offsets = [7, 0], sizes = [1, 128], strides = [1, 1]} : vector<16x128xf32> to vector<1x128xf32>
    %179 = vector.broadcast %178 : vector<1x128xf32> to vector<16x128xf32>
    %180 = arith.mulf %177, %179 : vector<16x128xf32>
    %181 = vector.extract_strided_slice %63 {offsets = [8, 0], sizes = [1, 128], strides = [1, 1]} : vector<16x128xf32> to vector<1x128xf32>
    %182 = vector.broadcast %181 : vector<1x128xf32> to vector<16x128xf32>
    %183 = arith.mulf %182, %6 : vector<16x128xf32>
    %184 = math.exp %183 : vector<16x128xf32>
    %185 = vector.extract_strided_slice %65 {offsets = [0, 8], sizes = [16, 1], strides = [1, 1]} : vector<64x16xf32> to vector<16x1xf32>
    %186 = vector.extract_strided_slice %65 {offsets = [32, 8], sizes = [16, 1], strides = [1, 1]} : vector<64x16xf32> to vector<16x1xf32>
    %187 = vector.shape_cast %185 : vector<16x1xf32> to vector<16x1xf32>
    %188 = vector.broadcast %187 : vector<16x1xf32> to vector<16x128xf32>
    %189 = vector.shape_cast %186 : vector<16x1xf32> to vector<16x1xf32>
    %190 = vector.broadcast %189 : vector<16x1xf32> to vector<16x128xf32>
    %191 = arith.select %68, %188, %190 : vector<16x128xi1>, vector<16x128xf32>
    %192 = vector.extract_strided_slice %64 {offsets = [8, 0], sizes = [1, 128], strides = [1, 1]} : vector<16x128xf32> to vector<1x128xf32>
    %193 = vector.broadcast %192 : vector<1x128xf32> to vector<16x128xf32>
    %194 = arith.mulf %191, %193 : vector<16x128xf32>
    %195 = vector.extract_strided_slice %63 {offsets = [9, 0], sizes = [1, 128], strides = [1, 1]} : vector<16x128xf32> to vector<1x128xf32>
    %196 = vector.broadcast %195 : vector<1x128xf32> to vector<16x128xf32>
    %197 = arith.mulf %196, %6 : vector<16x128xf32>
    %198 = math.exp %197 : vector<16x128xf32>
    %199 = vector.extract_strided_slice %65 {offsets = [0, 9], sizes = [16, 1], strides = [1, 1]} : vector<64x16xf32> to vector<16x1xf32>
    %200 = vector.extract_strided_slice %65 {offsets = [32, 9], sizes = [16, 1], strides = [1, 1]} : vector<64x16xf32> to vector<16x1xf32>
    %201 = vector.shape_cast %199 : vector<16x1xf32> to vector<16x1xf32>
    %202 = vector.broadcast %201 : vector<16x1xf32> to vector<16x128xf32>
    %203 = vector.shape_cast %200 : vector<16x1xf32> to vector<16x1xf32>
    %204 = vector.broadcast %203 : vector<16x1xf32> to vector<16x128xf32>
    %205 = arith.select %68, %202, %204 : vector<16x128xi1>, vector<16x128xf32>
    %206 = vector.extract_strided_slice %64 {offsets = [9, 0], sizes = [1, 128], strides = [1, 1]} : vector<16x128xf32> to vector<1x128xf32>
    %207 = vector.broadcast %206 : vector<1x128xf32> to vector<16x128xf32>
    %208 = arith.mulf %205, %207 : vector<16x128xf32>
    %209 = vector.extract_strided_slice %63 {offsets = [10, 0], sizes = [1, 128], strides = [1, 1]} : vector<16x128xf32> to vector<1x128xf32>
    %210 = vector.broadcast %209 : vector<1x128xf32> to vector<16x128xf32>
    %211 = arith.mulf %210, %6 : vector<16x128xf32>
    %212 = math.exp %211 : vector<16x128xf32>
    %213 = vector.extract_strided_slice %65 {offsets = [0, 10], sizes = [16, 1], strides = [1, 1]} : vector<64x16xf32> to vector<16x1xf32>
    %214 = vector.extract_strided_slice %65 {offsets = [32, 10], sizes = [16, 1], strides = [1, 1]} : vector<64x16xf32> to vector<16x1xf32>
    %215 = vector.shape_cast %213 : vector<16x1xf32> to vector<16x1xf32>
    %216 = vector.broadcast %215 : vector<16x1xf32> to vector<16x128xf32>
    %217 = vector.shape_cast %214 : vector<16x1xf32> to vector<16x1xf32>
    %218 = vector.broadcast %217 : vector<16x1xf32> to vector<16x128xf32>
    %219 = arith.select %68, %216, %218 : vector<16x128xi1>, vector<16x128xf32>
    %220 = vector.extract_strided_slice %64 {offsets = [10, 0], sizes = [1, 128], strides = [1, 1]} : vector<16x128xf32> to vector<1x128xf32>
    %221 = vector.broadcast %220 : vector<1x128xf32> to vector<16x128xf32>
    %222 = arith.mulf %219, %221 : vector<16x128xf32>
    %223 = vector.extract_strided_slice %63 {offsets = [11, 0], sizes = [1, 128], strides = [1, 1]} : vector<16x128xf32> to vector<1x128xf32>
    %224 = vector.broadcast %223 : vector<1x128xf32> to vector<16x128xf32>
    %225 = arith.mulf %224, %6 : vector<16x128xf32>
    %226 = math.exp %225 : vector<16x128xf32>
    %227 = vector.extract_strided_slice %65 {offsets = [0, 11], sizes = [16, 1], strides = [1, 1]} : vector<64x16xf32> to vector<16x1xf32>
    %228 = vector.extract_strided_slice %65 {offsets = [32, 11], sizes = [16, 1], strides = [1, 1]} : vector<64x16xf32> to vector<16x1xf32>
    %229 = vector.shape_cast %227 : vector<16x1xf32> to vector<16x1xf32>
    %230 = vector.broadcast %229 : vector<16x1xf32> to vector<16x128xf32>
    %231 = vector.shape_cast %228 : vector<16x1xf32> to vector<16x1xf32>
    %232 = vector.broadcast %231 : vector<16x1xf32> to vector<16x128xf32>
    %233 = arith.select %68, %230, %232 : vector<16x128xi1>, vector<16x128xf32>
    %234 = vector.extract_strided_slice %64 {offsets = [11, 0], sizes = [1, 128], strides = [1, 1]} : vector<16x128xf32> to vector<1x128xf32>
    %235 = vector.broadcast %234 : vector<1x128xf32> to vector<16x128xf32>
    %236 = arith.mulf %233, %235 : vector<16x128xf32>
    %237 = vector.extract_strided_slice %63 {offsets = [12, 0], sizes = [1, 128], strides = [1, 1]} : vector<16x128xf32> to vector<1x128xf32>
    %238 = vector.broadcast %237 : vector<1x128xf32> to vector<16x128xf32>
    %239 = arith.mulf %238, %6 : vector<16x128xf32>
    %240 = math.exp %239 : vector<16x128xf32>
    %241 = vector.extract_strided_slice %65 {offsets = [0, 12], sizes = [16, 1], strides = [1, 1]} : vector<64x16xf32> to vector<16x1xf32>
    %242 = vector.extract_strided_slice %65 {offsets = [32, 12], sizes = [16, 1], strides = [1, 1]} : vector<64x16xf32> to vector<16x1xf32>
    %243 = vector.shape_cast %241 : vector<16x1xf32> to vector<16x1xf32>
    %244 = vector.broadcast %243 : vector<16x1xf32> to vector<16x128xf32>
    %245 = vector.shape_cast %242 : vector<16x1xf32> to vector<16x1xf32>
    %246 = vector.broadcast %245 : vector<16x1xf32> to vector<16x128xf32>
    %247 = arith.select %68, %244, %246 : vector<16x128xi1>, vector<16x128xf32>
    %248 = vector.extract_strided_slice %64 {offsets = [12, 0], sizes = [1, 128], strides = [1, 1]} : vector<16x128xf32> to vector<1x128xf32>
    %249 = vector.broadcast %248 : vector<1x128xf32> to vector<16x128xf32>
    %250 = arith.mulf %247, %249 : vector<16x128xf32>
    %251 = vector.extract_strided_slice %63 {offsets = [13, 0], sizes = [1, 128], strides = [1, 1]} : vector<16x128xf32> to vector<1x128xf32>
    %252 = vector.broadcast %251 : vector<1x128xf32> to vector<16x128xf32>
    %253 = arith.mulf %252, %6 : vector<16x128xf32>
    %254 = math.exp %253 : vector<16x128xf32>
    %255 = vector.extract_strided_slice %65 {offsets = [0, 13], sizes = [16, 1], strides = [1, 1]} : vector<64x16xf32> to vector<16x1xf32>
    %256 = vector.extract_strided_slice %65 {offsets = [32, 13], sizes = [16, 1], strides = [1, 1]} : vector<64x16xf32> to vector<16x1xf32>
    %257 = vector.shape_cast %255 : vector<16x1xf32> to vector<16x1xf32>
    %258 = vector.broadcast %257 : vector<16x1xf32> to vector<16x128xf32>
    %259 = vector.shape_cast %256 : vector<16x1xf32> to vector<16x1xf32>
    %260 = vector.broadcast %259 : vector<16x1xf32> to vector<16x128xf32>
    %261 = arith.select %68, %258, %260 : vector<16x128xi1>, vector<16x128xf32>
    %262 = vector.extract_strided_slice %64 {offsets = [13, 0], sizes = [1, 128], strides = [1, 1]} : vector<16x128xf32> to vector<1x128xf32>
    %263 = vector.broadcast %262 : vector<1x128xf32> to vector<16x128xf32>
    %264 = arith.mulf %261, %263 : vector<16x128xf32>
    %265 = vector.extract_strided_slice %63 {offsets = [14, 0], sizes = [1, 128], strides = [1, 1]} : vector<16x128xf32> to vector<1x128xf32>
    %266 = vector.broadcast %265 : vector<1x128xf32> to vector<16x128xf32>
    %267 = arith.mulf %266, %6 : vector<16x128xf32>
    %268 = math.exp %267 : vector<16x128xf32>
    %269 = vector.extract_strided_slice %65 {offsets = [0, 14], sizes = [16, 1], strides = [1, 1]} : vector<64x16xf32> to vector<16x1xf32>
    %270 = vector.extract_strided_slice %65 {offsets = [32, 14], sizes = [16, 1], strides = [1, 1]} : vector<64x16xf32> to vector<16x1xf32>
    %271 = vector.shape_cast %269 : vector<16x1xf32> to vector<16x1xf32>
    %272 = vector.broadcast %271 : vector<16x1xf32> to vector<16x128xf32>
    %273 = vector.shape_cast %270 : vector<16x1xf32> to vector<16x1xf32>
    %274 = vector.broadcast %273 : vector<16x1xf32> to vector<16x128xf32>
    %275 = arith.select %68, %272, %274 : vector<16x128xi1>, vector<16x128xf32>
    %276 = vector.extract_strided_slice %64 {offsets = [14, 0], sizes = [1, 128], strides = [1, 1]} : vector<16x128xf32> to vector<1x128xf32>
    %277 = vector.broadcast %276 : vector<1x128xf32> to vector<16x128xf32>
    %278 = arith.mulf %275, %277 : vector<16x128xf32>
    %279 = vector.extract_strided_slice %63 {offsets = [15, 0], sizes = [1, 128], strides = [1, 1]} : vector<16x128xf32> to vector<1x128xf32>
    %280 = vector.broadcast %279 : vector<1x128xf32> to vector<16x128xf32>
    %281 = arith.mulf %280, %6 : vector<16x128xf32>
    %282 = math.exp %281 : vector<16x128xf32>
    %283 = vector.extract_strided_slice %65 {offsets = [0, 15], sizes = [16, 1], strides = [1, 1]} : vector<64x16xf32> to vector<16x1xf32>
    %284 = vector.extract_strided_slice %65 {offsets = [32, 15], sizes = [16, 1], strides = [1, 1]} : vector<64x16xf32> to vector<16x1xf32>
    %285 = vector.shape_cast %283 : vector<16x1xf32> to vector<16x1xf32>
    %286 = vector.broadcast %285 : vector<16x1xf32> to vector<16x128xf32>
    %287 = vector.shape_cast %284 : vector<16x1xf32> to vector<16x1xf32>
    %288 = vector.broadcast %287 : vector<16x1xf32> to vector<16x128xf32>
    %289 = arith.select %68, %286, %288 : vector<16x128xi1>, vector<16x128xf32>
    %290 = vector.extract_strided_slice %64 {offsets = [15, 0], sizes = [1, 128], strides = [1, 1]} : vector<16x128xf32> to vector<1x128xf32>
    %291 = vector.broadcast %290 : vector<1x128xf32> to vector<16x128xf32>
    %292 = arith.mulf %289, %291 : vector<16x128xf32>
    %cst_22 = arith.constant 0.000000e+00 : f32
    %293 = vector.broadcast %cst_22 : f32 to vector<16x128xf32>
    %294 = arith.mulf %72, %293 : vector<16x128xf32>
    %295 = arith.addf %294, %82 : vector<16x128xf32>
    %296 = arith.mulf %86, %295 : vector<16x128xf32>
    %297 = arith.addf %296, %96 : vector<16x128xf32>
    %298 = arith.mulf %100, %297 : vector<16x128xf32>
    %299 = arith.addf %298, %110 : vector<16x128xf32>
    %300 = arith.mulf %114, %299 : vector<16x128xf32>
    %301 = arith.addf %300, %124 : vector<16x128xf32>
    %302 = arith.mulf %128, %301 : vector<16x128xf32>
    %303 = arith.addf %302, %138 : vector<16x128xf32>
    %304 = arith.mulf %142, %303 : vector<16x128xf32>
    %305 = arith.addf %304, %152 : vector<16x128xf32>
    %306 = arith.mulf %156, %305 : vector<16x128xf32>
    %307 = arith.addf %306, %166 : vector<16x128xf32>
    %308 = arith.mulf %170, %307 : vector<16x128xf32>
    %309 = arith.addf %308, %180 : vector<16x128xf32>
    %cst_23 = arith.constant 0.000000e+00 : f32
    %310 = vector.broadcast %cst_23 : f32 to vector<16x128xf32>
    %311 = arith.mulf %184, %310 : vector<16x128xf32>
    %312 = arith.addf %311, %194 : vector<16x128xf32>
    %313 = arith.mulf %198, %312 : vector<16x128xf32>
    %314 = arith.addf %313, %208 : vector<16x128xf32>
    %315 = arith.mulf %212, %314 : vector<16x128xf32>
    %316 = arith.addf %315, %222 : vector<16x128xf32>
    %317 = arith.mulf %226, %316 : vector<16x128xf32>
    %318 = arith.addf %317, %236 : vector<16x128xf32>
    %319 = arith.mulf %240, %318 : vector<16x128xf32>
    %320 = arith.addf %319, %250 : vector<16x128xf32>
    %321 = arith.mulf %254, %320 : vector<16x128xf32>
    %322 = arith.addf %321, %264 : vector<16x128xf32>
    %323 = arith.mulf %268, %322 : vector<16x128xf32>
    %324 = arith.addf %323, %278 : vector<16x128xf32>
    %325 = arith.mulf %282, %324 : vector<16x128xf32>
    %326 = arith.addf %325, %292 : vector<16x128xf32>
    %327 = vector.extract_strided_slice %65 {offsets = [16, 0], sizes = [16, 1], strides = [1, 1]} : vector<64x16xf32> to vector<16x1xf32>
    %328 = vector.extract_strided_slice %65 {offsets = [48, 0], sizes = [16, 1], strides = [1, 1]} : vector<64x16xf32> to vector<16x1xf32>
    %329 = vector.shape_cast %327 : vector<16x1xf32> to vector<16x1xf32>
    %330 = vector.broadcast %329 : vector<16x1xf32> to vector<16x128xf32>
    %331 = vector.shape_cast %328 : vector<16x1xf32> to vector<16x1xf32>
    %332 = vector.broadcast %331 : vector<16x1xf32> to vector<16x128xf32>
    %333 = arith.select %68, %330, %332 : vector<16x128xi1>, vector<16x128xf32>
    %334 = arith.mulf %295, %333 : vector<16x128xf32>
    %cst_24 = arith.constant dense<0.000000e+00> : vector<128xf32>
    %335 = vector.multi_reduction <add>, %334, %cst_24 [0] : vector<16x128xf32> to vector<128xf32>
    %336 = vector.shape_cast %335 : vector<128xf32> to vector<1x128xf32>
    %337 = vector.extract_strided_slice %65 {offsets = [16, 1], sizes = [16, 1], strides = [1, 1]} : vector<64x16xf32> to vector<16x1xf32>
    %338 = vector.extract_strided_slice %65 {offsets = [48, 1], sizes = [16, 1], strides = [1, 1]} : vector<64x16xf32> to vector<16x1xf32>
    %339 = vector.shape_cast %337 : vector<16x1xf32> to vector<16x1xf32>
    %340 = vector.broadcast %339 : vector<16x1xf32> to vector<16x128xf32>
    %341 = vector.shape_cast %338 : vector<16x1xf32> to vector<16x1xf32>
    %342 = vector.broadcast %341 : vector<16x1xf32> to vector<16x128xf32>
    %343 = arith.select %68, %340, %342 : vector<16x128xi1>, vector<16x128xf32>
    %344 = arith.mulf %297, %343 : vector<16x128xf32>
    %cst_25 = arith.constant dense<0.000000e+00> : vector<128xf32>
    %345 = vector.multi_reduction <add>, %344, %cst_25 [0] : vector<16x128xf32> to vector<128xf32>
    %346 = vector.shape_cast %345 : vector<128xf32> to vector<1x128xf32>
    %347 = vector.extract_strided_slice %65 {offsets = [16, 2], sizes = [16, 1], strides = [1, 1]} : vector<64x16xf32> to vector<16x1xf32>
    %348 = vector.extract_strided_slice %65 {offsets = [48, 2], sizes = [16, 1], strides = [1, 1]} : vector<64x16xf32> to vector<16x1xf32>
    %349 = vector.shape_cast %347 : vector<16x1xf32> to vector<16x1xf32>
    %350 = vector.broadcast %349 : vector<16x1xf32> to vector<16x128xf32>
    %351 = vector.shape_cast %348 : vector<16x1xf32> to vector<16x1xf32>
    %352 = vector.broadcast %351 : vector<16x1xf32> to vector<16x128xf32>
    %353 = arith.select %68, %350, %352 : vector<16x128xi1>, vector<16x128xf32>
    %354 = arith.mulf %299, %353 : vector<16x128xf32>
    %cst_26 = arith.constant dense<0.000000e+00> : vector<128xf32>
    %355 = vector.multi_reduction <add>, %354, %cst_26 [0] : vector<16x128xf32> to vector<128xf32>
    %356 = vector.shape_cast %355 : vector<128xf32> to vector<1x128xf32>
    %357 = vector.extract_strided_slice %65 {offsets = [16, 3], sizes = [16, 1], strides = [1, 1]} : vector<64x16xf32> to vector<16x1xf32>
    %358 = vector.extract_strided_slice %65 {offsets = [48, 3], sizes = [16, 1], strides = [1, 1]} : vector<64x16xf32> to vector<16x1xf32>
    %359 = vector.shape_cast %357 : vector<16x1xf32> to vector<16x1xf32>
    %360 = vector.broadcast %359 : vector<16x1xf32> to vector<16x128xf32>
    %361 = vector.shape_cast %358 : vector<16x1xf32> to vector<16x1xf32>
    %362 = vector.broadcast %361 : vector<16x1xf32> to vector<16x128xf32>
    %363 = arith.select %68, %360, %362 : vector<16x128xi1>, vector<16x128xf32>
    %364 = arith.mulf %301, %363 : vector<16x128xf32>
    %cst_27 = arith.constant dense<0.000000e+00> : vector<128xf32>
    %365 = vector.multi_reduction <add>, %364, %cst_27 [0] : vector<16x128xf32> to vector<128xf32>
    %366 = vector.shape_cast %365 : vector<128xf32> to vector<1x128xf32>
    %367 = vector.extract_strided_slice %65 {offsets = [16, 4], sizes = [16, 1], strides = [1, 1]} : vector<64x16xf32> to vector<16x1xf32>
    %368 = vector.extract_strided_slice %65 {offsets = [48, 4], sizes = [16, 1], strides = [1, 1]} : vector<64x16xf32> to vector<16x1xf32>
    %369 = vector.shape_cast %367 : vector<16x1xf32> to vector<16x1xf32>
    %370 = vector.broadcast %369 : vector<16x1xf32> to vector<16x128xf32>
    %371 = vector.shape_cast %368 : vector<16x1xf32> to vector<16x1xf32>
    %372 = vector.broadcast %371 : vector<16x1xf32> to vector<16x128xf32>
    %373 = arith.select %68, %370, %372 : vector<16x128xi1>, vector<16x128xf32>
    %374 = arith.mulf %303, %373 : vector<16x128xf32>
    %cst_28 = arith.constant dense<0.000000e+00> : vector<128xf32>
    %375 = vector.multi_reduction <add>, %374, %cst_28 [0] : vector<16x128xf32> to vector<128xf32>
    %376 = vector.shape_cast %375 : vector<128xf32> to vector<1x128xf32>
    %377 = vector.extract_strided_slice %65 {offsets = [16, 5], sizes = [16, 1], strides = [1, 1]} : vector<64x16xf32> to vector<16x1xf32>
    %378 = vector.extract_strided_slice %65 {offsets = [48, 5], sizes = [16, 1], strides = [1, 1]} : vector<64x16xf32> to vector<16x1xf32>
    %379 = vector.shape_cast %377 : vector<16x1xf32> to vector<16x1xf32>
    %380 = vector.broadcast %379 : vector<16x1xf32> to vector<16x128xf32>
    %381 = vector.shape_cast %378 : vector<16x1xf32> to vector<16x1xf32>
    %382 = vector.broadcast %381 : vector<16x1xf32> to vector<16x128xf32>
    %383 = arith.select %68, %380, %382 : vector<16x128xi1>, vector<16x128xf32>
    %384 = arith.mulf %305, %383 : vector<16x128xf32>
    %cst_29 = arith.constant dense<0.000000e+00> : vector<128xf32>
    %385 = vector.multi_reduction <add>, %384, %cst_29 [0] : vector<16x128xf32> to vector<128xf32>
    %386 = vector.shape_cast %385 : vector<128xf32> to vector<1x128xf32>
    %387 = vector.extract_strided_slice %65 {offsets = [16, 6], sizes = [16, 1], strides = [1, 1]} : vector<64x16xf32> to vector<16x1xf32>
    %388 = vector.extract_strided_slice %65 {offsets = [48, 6], sizes = [16, 1], strides = [1, 1]} : vector<64x16xf32> to vector<16x1xf32>
    %389 = vector.shape_cast %387 : vector<16x1xf32> to vector<16x1xf32>
    %390 = vector.broadcast %389 : vector<16x1xf32> to vector<16x128xf32>
    %391 = vector.shape_cast %388 : vector<16x1xf32> to vector<16x1xf32>
    %392 = vector.broadcast %391 : vector<16x1xf32> to vector<16x128xf32>
    %393 = arith.select %68, %390, %392 : vector<16x128xi1>, vector<16x128xf32>
    %394 = arith.mulf %307, %393 : vector<16x128xf32>
    %cst_30 = arith.constant dense<0.000000e+00> : vector<128xf32>
    %395 = vector.multi_reduction <add>, %394, %cst_30 [0] : vector<16x128xf32> to vector<128xf32>
    %396 = vector.shape_cast %395 : vector<128xf32> to vector<1x128xf32>
    %397 = vector.extract_strided_slice %65 {offsets = [16, 7], sizes = [16, 1], strides = [1, 1]} : vector<64x16xf32> to vector<16x1xf32>
    %398 = vector.extract_strided_slice %65 {offsets = [48, 7], sizes = [16, 1], strides = [1, 1]} : vector<64x16xf32> to vector<16x1xf32>
    %399 = vector.shape_cast %397 : vector<16x1xf32> to vector<16x1xf32>
    %400 = vector.broadcast %399 : vector<16x1xf32> to vector<16x128xf32>
    %401 = vector.shape_cast %398 : vector<16x1xf32> to vector<16x1xf32>
    %402 = vector.broadcast %401 : vector<16x1xf32> to vector<16x128xf32>
    %403 = arith.select %68, %400, %402 : vector<16x128xi1>, vector<16x128xf32>
    %404 = arith.mulf %309, %403 : vector<16x128xf32>
    %cst_31 = arith.constant dense<0.000000e+00> : vector<128xf32>
    %405 = vector.multi_reduction <add>, %404, %cst_31 [0] : vector<16x128xf32> to vector<128xf32>
    %406 = vector.shape_cast %405 : vector<128xf32> to vector<1x128xf32>
    %407 = vector.extract_strided_slice %65 {offsets = [16, 8], sizes = [16, 1], strides = [1, 1]} : vector<64x16xf32> to vector<16x1xf32>
    %408 = vector.extract_strided_slice %65 {offsets = [48, 8], sizes = [16, 1], strides = [1, 1]} : vector<64x16xf32> to vector<16x1xf32>
    %409 = vector.shape_cast %407 : vector<16x1xf32> to vector<16x1xf32>
    %410 = vector.broadcast %409 : vector<16x1xf32> to vector<16x128xf32>
    %411 = vector.shape_cast %408 : vector<16x1xf32> to vector<16x1xf32>
    %412 = vector.broadcast %411 : vector<16x1xf32> to vector<16x128xf32>
    %413 = arith.select %68, %410, %412 : vector<16x128xi1>, vector<16x128xf32>
    %414 = arith.mulf %312, %413 : vector<16x128xf32>
    %cst_32 = arith.constant dense<0.000000e+00> : vector<128xf32>
    %415 = vector.multi_reduction <add>, %414, %cst_32 [0] : vector<16x128xf32> to vector<128xf32>
    %416 = vector.shape_cast %415 : vector<128xf32> to vector<1x128xf32>
    %417 = vector.extract_strided_slice %65 {offsets = [16, 9], sizes = [16, 1], strides = [1, 1]} : vector<64x16xf32> to vector<16x1xf32>
    %418 = vector.extract_strided_slice %65 {offsets = [48, 9], sizes = [16, 1], strides = [1, 1]} : vector<64x16xf32> to vector<16x1xf32>
    %419 = vector.shape_cast %417 : vector<16x1xf32> to vector<16x1xf32>
    %420 = vector.broadcast %419 : vector<16x1xf32> to vector<16x128xf32>
    %421 = vector.shape_cast %418 : vector<16x1xf32> to vector<16x1xf32>
    %422 = vector.broadcast %421 : vector<16x1xf32> to vector<16x128xf32>
    %423 = arith.select %68, %420, %422 : vector<16x128xi1>, vector<16x128xf32>
    %424 = arith.mulf %314, %423 : vector<16x128xf32>
    %cst_33 = arith.constant dense<0.000000e+00> : vector<128xf32>
    %425 = vector.multi_reduction <add>, %424, %cst_33 [0] : vector<16x128xf32> to vector<128xf32>
    %426 = vector.shape_cast %425 : vector<128xf32> to vector<1x128xf32>
    %427 = vector.extract_strided_slice %65 {offsets = [16, 10], sizes = [16, 1], strides = [1, 1]} : vector<64x16xf32> to vector<16x1xf32>
    %428 = vector.extract_strided_slice %65 {offsets = [48, 10], sizes = [16, 1], strides = [1, 1]} : vector<64x16xf32> to vector<16x1xf32>
    %429 = vector.shape_cast %427 : vector<16x1xf32> to vector<16x1xf32>
    %430 = vector.broadcast %429 : vector<16x1xf32> to vector<16x128xf32>
    %431 = vector.shape_cast %428 : vector<16x1xf32> to vector<16x1xf32>
    %432 = vector.broadcast %431 : vector<16x1xf32> to vector<16x128xf32>
    %433 = arith.select %68, %430, %432 : vector<16x128xi1>, vector<16x128xf32>
    %434 = arith.mulf %316, %433 : vector<16x128xf32>
    %cst_34 = arith.constant dense<0.000000e+00> : vector<128xf32>
    %435 = vector.multi_reduction <add>, %434, %cst_34 [0] : vector<16x128xf32> to vector<128xf32>
    %436 = vector.shape_cast %435 : vector<128xf32> to vector<1x128xf32>
    %437 = vector.extract_strided_slice %65 {offsets = [16, 11], sizes = [16, 1], strides = [1, 1]} : vector<64x16xf32> to vector<16x1xf32>
    %438 = vector.extract_strided_slice %65 {offsets = [48, 11], sizes = [16, 1], strides = [1, 1]} : vector<64x16xf32> to vector<16x1xf32>
    %439 = vector.shape_cast %437 : vector<16x1xf32> to vector<16x1xf32>
    %440 = vector.broadcast %439 : vector<16x1xf32> to vector<16x128xf32>
    %441 = vector.shape_cast %438 : vector<16x1xf32> to vector<16x1xf32>
    %442 = vector.broadcast %441 : vector<16x1xf32> to vector<16x128xf32>
    %443 = arith.select %68, %440, %442 : vector<16x128xi1>, vector<16x128xf32>
    %444 = arith.mulf %318, %443 : vector<16x128xf32>
    %cst_35 = arith.constant dense<0.000000e+00> : vector<128xf32>
    %445 = vector.multi_reduction <add>, %444, %cst_35 [0] : vector<16x128xf32> to vector<128xf32>
    %446 = vector.shape_cast %445 : vector<128xf32> to vector<1x128xf32>
    %447 = vector.extract_strided_slice %65 {offsets = [16, 12], sizes = [16, 1], strides = [1, 1]} : vector<64x16xf32> to vector<16x1xf32>
    %448 = vector.extract_strided_slice %65 {offsets = [48, 12], sizes = [16, 1], strides = [1, 1]} : vector<64x16xf32> to vector<16x1xf32>
    %449 = vector.shape_cast %447 : vector<16x1xf32> to vector<16x1xf32>
    %450 = vector.broadcast %449 : vector<16x1xf32> to vector<16x128xf32>
    %451 = vector.shape_cast %448 : vector<16x1xf32> to vector<16x1xf32>
    %452 = vector.broadcast %451 : vector<16x1xf32> to vector<16x128xf32>
    %453 = arith.select %68, %450, %452 : vector<16x128xi1>, vector<16x128xf32>
    %454 = arith.mulf %320, %453 : vector<16x128xf32>
    %cst_36 = arith.constant dense<0.000000e+00> : vector<128xf32>
    %455 = vector.multi_reduction <add>, %454, %cst_36 [0] : vector<16x128xf32> to vector<128xf32>
    %456 = vector.shape_cast %455 : vector<128xf32> to vector<1x128xf32>
    %457 = vector.extract_strided_slice %65 {offsets = [16, 13], sizes = [16, 1], strides = [1, 1]} : vector<64x16xf32> to vector<16x1xf32>
    %458 = vector.extract_strided_slice %65 {offsets = [48, 13], sizes = [16, 1], strides = [1, 1]} : vector<64x16xf32> to vector<16x1xf32>
    %459 = vector.shape_cast %457 : vector<16x1xf32> to vector<16x1xf32>
    %460 = vector.broadcast %459 : vector<16x1xf32> to vector<16x128xf32>
    %461 = vector.shape_cast %458 : vector<16x1xf32> to vector<16x1xf32>
    %462 = vector.broadcast %461 : vector<16x1xf32> to vector<16x128xf32>
    %463 = arith.select %68, %460, %462 : vector<16x128xi1>, vector<16x128xf32>
    %464 = arith.mulf %322, %463 : vector<16x128xf32>
    %cst_37 = arith.constant dense<0.000000e+00> : vector<128xf32>
    %465 = vector.multi_reduction <add>, %464, %cst_37 [0] : vector<16x128xf32> to vector<128xf32>
    %466 = vector.shape_cast %465 : vector<128xf32> to vector<1x128xf32>
    %467 = vector.extract_strided_slice %65 {offsets = [16, 14], sizes = [16, 1], strides = [1, 1]} : vector<64x16xf32> to vector<16x1xf32>
    %468 = vector.extract_strided_slice %65 {offsets = [48, 14], sizes = [16, 1], strides = [1, 1]} : vector<64x16xf32> to vector<16x1xf32>
    %469 = vector.shape_cast %467 : vector<16x1xf32> to vector<16x1xf32>
    %470 = vector.broadcast %469 : vector<16x1xf32> to vector<16x128xf32>
    %471 = vector.shape_cast %468 : vector<16x1xf32> to vector<16x1xf32>
    %472 = vector.broadcast %471 : vector<16x1xf32> to vector<16x128xf32>
    %473 = arith.select %68, %470, %472 : vector<16x128xi1>, vector<16x128xf32>
    %474 = arith.mulf %324, %473 : vector<16x128xf32>
    %cst_38 = arith.constant dense<0.000000e+00> : vector<128xf32>
    %475 = vector.multi_reduction <add>, %474, %cst_38 [0] : vector<16x128xf32> to vector<128xf32>
    %476 = vector.shape_cast %475 : vector<128xf32> to vector<1x128xf32>
    %477 = vector.extract_strided_slice %65 {offsets = [16, 15], sizes = [16, 1], strides = [1, 1]} : vector<64x16xf32> to vector<16x1xf32>
    %478 = vector.extract_strided_slice %65 {offsets = [48, 15], sizes = [16, 1], strides = [1, 1]} : vector<64x16xf32> to vector<16x1xf32>
    %479 = vector.shape_cast %477 : vector<16x1xf32> to vector<16x1xf32>
    %480 = vector.broadcast %479 : vector<16x1xf32> to vector<16x128xf32>
    %481 = vector.shape_cast %478 : vector<16x1xf32> to vector<16x1xf32>
    %482 = vector.broadcast %481 : vector<16x1xf32> to vector<16x128xf32>
    %483 = arith.select %68, %480, %482 : vector<16x128xi1>, vector<16x128xf32>
    %484 = arith.mulf %326, %483 : vector<16x128xf32>
    %cst_39 = arith.constant dense<0.000000e+00> : vector<128xf32>
    %485 = vector.multi_reduction <add>, %484, %cst_39 [0] : vector<16x128xf32> to vector<128xf32>
    %486 = vector.shape_cast %485 : vector<128xf32> to vector<1x128xf32>
    %487 = tpu.concatenate %336, %346, %356, %366, %376, %386, %396, %406, %416, %426, %436, %446, %456, %466, %476, %486 in 0 : vector<1x128xf32>, vector<1x128xf32>, vector<1x128xf32>, vector<1x128xf32>, vector<1x128xf32>, vector<1x128xf32>, vector<1x128xf32>, vector<1x128xf32>, vector<1x128xf32>, vector<1x128xf32>, vector<1x128xf32>, vector<1x128xf32>, vector<1x128xf32>, vector<1x128xf32>, vector<1x128xf32>, vector<1x128xf32> -> vector<16x128xf32>
    %488 = vector.broadcast %11 : vector<1x128xf32> to vector<16x128xf32>
    %489 = arith.mulf %488, %53 : vector<16x128xf32>
    %490 = arith.addf %487, %489 : vector<16x128xf32>
    %cst_40 = arith.constant 0.000000e+00 : f32
    %491 = vector.broadcast %cst_40 : f32 to vector<16x128xf32>
    %492 = arith.subf %491, %23 : vector<16x128xf32>
    %493 = math.exp %492 : vector<16x128xf32>
    %cst_41 = arith.constant 1.000000e+00 : f32
    %494 = vector.broadcast %cst_41 : f32 to vector<16x128xf32>
    %495 = arith.addf %494, %493 : vector<16x128xf32>
    %cst_42 = arith.constant 1.000000e+00 : f32
    %496 = vector.broadcast %cst_42 : f32 to vector<16x128xf32>
    %497 = arith.divf %496, %495 : vector<16x128xf32>
    %498 = arith.mulf %23, %497 : vector<16x128xf32>
    %499 = arith.mulf %490, %498 : vector<16x128xf32>
    %cst_43 = arith.constant dense<0.000000e+00> : vector<16x64xf32>
    %500 = tpu.matmul %499, %5, %cst_43 {dimension_numbers = #tpu.dot_dimension_numbers<[1], [1], [0], [0], [0, 0, 1, 0], [], []>} : vector<16x128xf32>, vector<64x128xf32>, vector<16x64xf32> -> vector<16x64xf32>
    %501 = vector.extract_strided_slice %12 {offsets = [0, 0], sizes = [1, 64], strides = [1, 1]} : vector<1x128xf32> to vector<1x64xf32>
    %502 = vector.broadcast %501 : vector<1x64xf32> to vector<16x64xf32>
    %503 = arith.mulf %500, %502 : vector<16x64xf32>
    %cst_44 = arith.constant dense<0.000000e+00> : vector<16xf32>
    %504 = vector.multi_reduction <add>, %503, %cst_44 [1] : vector<16x64xf32> to vector<16xf32>
    %505 = vector.shape_cast %504 : vector<16xf32> to vector<16x1xf32>
    %506 = vector.extract_strided_slice %12 {offsets = [0, 64], sizes = [1, 1], strides = [1, 1]} : vector<1x128xf32> to vector<1x1xf32>
    %507 = vector.broadcast %506 : vector<1x1xf32> to vector<16x1xf32>
    %508 = arith.addf %505, %507 : vector<16x1xf32>
    %cst_45 = arith.constant 0.000000e+00 : f32
    %509 = vector.broadcast %cst_45 : f32 to vector<16x1xf32>
    %510 = arith.subf %509, %508 : vector<16x1xf32>
    %511 = math.exp %510 : vector<16x1xf32>
    %cst_46 = arith.constant 1.000000e+00 : f32
    %512 = vector.broadcast %cst_46 : f32 to vector<16x1xf32>
    %513 = arith.addf %512, %511 : vector<16x1xf32>
    %cst_47 = arith.constant 1.000000e+00 : f32
    %514 = vector.broadcast %cst_47 : f32 to vector<16x1xf32>
    %515 = arith.divf %514, %513 : vector<16x1xf32>
    %516 = vector.extract_strided_slice %500 {offsets = [0, 0], sizes = [16, 32], strides = [1, 1]} : vector<16x64xf32> to vector<16x32xf32>
    %517 = vector.broadcast %515 : vector<16x1xf32> to vector<16x32xf32>
    %518 = arith.mulf %517, %516 : vector<16x32xf32>
    %cst_48 = arith.constant 1.000000e+00 : f32
    %519 = vector.broadcast %cst_48 : f32 to vector<16x1xf32>
    %520 = arith.subf %519, %515 : vector<16x1xf32>
    %521 = vector.extract_strided_slice %500 {offsets = [0, 32], sizes = [16, 32], strides = [1, 1]} : vector<16x64xf32> to vector<16x32xf32>
    %522 = vector.broadcast %520 : vector<16x1xf32> to vector<16x32xf32>
    %523 = arith.mulf %522, %521 : vector<16x32xf32>
    %524 = arith.addf %518, %523 : vector<16x32xf32>
    %c0_49 = arith.constant 0 : index
    %c0_50 = arith.constant 0 : index
    %525 = vector.load %arg3[%c0_49, %c0_50] : memref<16x32xf32, #tpu.memory_space<vmem>>, vector<16x32xf32>
    tpu.vector_store %arg3[%c0_49, %c0_50], %524 {strides = array<i32>} : memref<16x32xf32, #tpu.memory_space<vmem>>, vector<16x32xf32>,
    return
  }
}

</mosaic_0001>

<bundles_post_ra>
// kernel: mamba_bidirectional_forward.1
= control target key start
LH: loop header
LB: loop body
LE: loop exit
PB: predicated region body
PF: predicated region fallthrough
CT: control target
= control target key end

     0   :  { %vm70_vm0 = vcmask 261120   ;;  %s3833_s0 = inlined_call_operand.vmem [shape: f32[16,32], index: 0, kind: input, shape index: {}]   ;;  %s3834_s1 = inlined_call_operand.vmem [shape: f32[344,128], index: 1, kind: input, shape index: {}]   ;;  %s3835_s2 = inlined_call_operand.vmem [shape: f32[80,16], index: 2, kind: input, shape index: {}]   ;;  %s3836_s3 = inlined_call_operand.hbm [shape: f32[16,32], index: 3, kind: output, shape index: {}]  }
   0x1   :  { %v17_v0 = vld [vmem:[%s3834_s1] sm:$0xff]  ;;  %v18_v1 = vld [vmem:[%s3834_s1 + $0x8] sm:$0xff]  ;;  %v19_v2 = vld [vmem:[%s3834_s1 + $0x10] sm:$0xff] }
   0x2   :  { %v2159_v3 = vpack.c.bf16 %v18_v1, %v17_v0  ;;  %v20_v4 = vld [vmem:[%s3834_s1 + $0x18] sm:$0xff]  ;;  %v15_v5 = vld [vmem:[%s3833_s0] sm:$0xff]  ;;  %v16_v7 = vld [vmem:[%s3833_s0 + $0x8] sm:$0xff] }
   0x3   :  { %v2163_v6 = vpack.c.bf16 %v20_v4, %v19_v2  ;;  %2052 = vmatprep.mubr.msk.f32.mxu0 %vm70_vm0, %v15_v5  ;;  %v21_v8 = vld [vmem:[%s3834_s1 + $0x20] sm:$0xff]  ;;  %v22_v9 = vld [vmem:[%s3834_s1 + $0x28] sm:$0xff] }
   0x4   :  { %2160 = vmatprep.subr.bf16.mxu0 %v2159_v3 }
   0x5   :  { %8 = vsyncpa [#allocation3], 0  ;;  %2162 = vmatpush3.bf16.msra.mxu0 %v2159_v3  ;;  %v2171_v10 = vpack.c.bf16 %v22_v9, %v21_v8  ;;  %v2167_v11 = vpack.c.bf16 %v16_v7, %v15_v5  ;;  %v60_v12 = vld [vmem:[%s3835_s2] sm:$0xff]  ;;  %vm152_vm1 = vcmask 130048   ;;  %v61_v13 = vld [vmem:[%s3835_s2 + $0x8] sm:$0xff]  ;;  %s2513_s8 = smov 64   ;;  %v3837_v63 = vlaneseq }
   0x6   :  { %2164 = vmatprep.subr.bf16.mxu0 %v2163_v6  ;;  %v23_v14 = vld [vmem:[%s3834_s1 + $0x30] sm:$0xff]  ;;  %v24_v15 = vld [vmem:[%s3834_s1 + $0x38] sm:$0xff]  ;;  %vm323_vm2 = vcmask 523264   ;;  %v64_v32 = vld [vmem:[%s3835_s2 + $0x20] sm:$0xff]  ;;  %vm1766_vm6 = vcmask 1040384   ;;  %vm1768_vm7 = vcmask 1041408  }
   0x7   :  { %2172 = vmatprep.subr.bf16.mxu1 %v2171_v10  ;;  %v2175_v16 = vpack.c.bf16 %v24_v15, %v23_v14  ;;  %v62_v21 = vld [vmem:[%s3835_s2 + $0x10] sm:$0xff]  ;;  %v63_v31 = vld [vmem:[%s3835_s2 + $0x18] sm:$0xff]  ;;  %v65_v33 = vld [vmem:[%s3835_s2 + $0x28] sm:$0xff]  ;;  %v2689_v0 = vshrl.u32 %v3837_v63, 7  ;;  %vm1770_vm8 = vcmask 1042432   ;;  %vm1772_vm9 = vcmask 1043456  }
   0x8   :  { %2174 = vmatpush3.bf16.msra.mxu1 %v2171_v10  ;;  %v66_v34 = vld [vmem:[%s3835_s2 + $0x30] sm:$0xff]  ;;  %v67_v35 = vld [vmem:[%s3835_s2 + $0x38] sm:$0xff]  ;;  %v68_v36 = vld [vmem:[%s3835_s2 + $0x40] sm:$0xff]  ;;  %vm1774_vm10 = vcmask 1044480   ;;  %vm1776_vm11 = vcmask 1045504   ;;  %vm1778_vm12 = vcmask 1046528  }
   0x9   :  { %2166 = vmatpush3.bf16.msra.mxu0 %v2163_v6  ;;  %2176 = vmatprep.subr.bf16.mxu1 %v2175_v16  ;;  %v69_v37 = vld [vmem:[%s3835_s2 + $0x48] sm:$0xff]  ;;  %v25_v38 = vld [vmem:[%s3834_s1 + $0x40] sm:$0xff]  ;;  %v27_v41 = vld [vmem:[%s3834_s1 + $0x50] sm:$0xff]  ;;  %v2692_v1 = vsub.s32 3, %v2689_v0  ;;  %v2702_v4 = vsub.s32 4, %v2689_v0  ;;  %v2705_v5 = vsub.s32 2, %v2689_v0 }
   0xa   :  { %2168 = vmatprep.subr.bf16.mxu0 %v2167_v11  ;;  %v26_v39 = vld [vmem:[%s3834_s1 + $0x48] sm:$0xff]  ;;  %v28_v42 = vld [vmem:[%s3834_s1 + $0x58] sm:$0xff]  ;;  %v29_v44 = vld [vmem:[%s3834_s1 + $0x60] sm:$0xff]  ;;  %s2532_s10 = smov [#allocation2]  }
   0xb   :  { %v2183_v40 = vpack.c.bf16 %v26_v39, %v25_v38  ;;  %v2187_v43 = vpack.c.bf16 %v28_v42, %v27_v41  ;;  %v30_v45 = vld [vmem:[%s3834_s1 + $0x68] sm:$0xff]  ;;  %v31_v47 = vld [vmem:[%s3834_s1 + $0x70] sm:$0xff]  ;;  %v32_v48 = vld [vmem:[%s3834_s1 + $0x78] sm:$0xff]  ;;  %s1955_s11 = sshll.u32 %s2532_s10, 4  ;;  %s1956_s11 = int_to_ptr.vmem [resolvable:$true] %s1955_s11 }
   0xc   :  { %2053 = vmatmul.mubr.msk.f32.vlgmr.msra.gmra.mrb[0].mxu0 %vm70_vm0, %v16_v7  ;;  %2178 = vmatpush3.bf16.msra.mxu1 %v2175_v16  ;;  %v2191_v46 = vpack.c.bf16 %v30_v45, %v29_v44  ;;  %v2195_v49 = vpack.c.bf16 %v32_v48, %v31_v47  ;;  %v33_v50 = vld [vmem:[%s3834_s1 + $0x80] sm:$0xff]  ;;  %v34_v51 = vld [vmem:[%s3834_s1 + $0x88] sm:$0xff]  ;;  %v35_v53 = vld [vmem:[%s3834_s1 + $0x90] sm:$0xff]  ;;  %s2489_s12 = scalar_lea.vmem %s1956_s11, 256  ;;  %p2494_p1 = scmp.lt.s32.totalorder %s1956_s11, %s1956_s11 }
   0xd   :  { %2170 = vmatpush3.bf16.msra.mxu0 %v2167_v11  ;;  %2059 = vmatprep.mubr.msk.f32.mxu0 %vm152_vm1, %v60_v12  ;;  %v2199_v52 = vpack.c.bf16 %v34_v51, %v33_v50  ;;  %v36_v54 = vld [vmem:[%s3834_s1 + $0x98] sm:$0xff]  ;;  %v37_v56 = vld [vmem:[%s3834_s1 + $0xa0] sm:$0xff]  ;;  %v38_v57 = vld [vmem:[%s3834_s1 + $0xa8] sm:$0xff]  ;;  %v2712_v11 = vsub.s32 1, %v2689_v0  ;;  %p2490_p0 = scmp.ne.s32.totalorder %s1956_s11, %s2489_s12  ;;  %p2495_p2 = scmp.lt.s32.totalorder %s2489_s12, %s2489_s12 }
   0xe   :  { %v2203_v55 = vpack.c.bf16 %v36_v54, %v35_v53  ;;  %v2207_v58 = vpack.c.bf16 %v38_v57, %v37_v56  ;;  %v39_v59 = vld [vmem:[%s3834_s1 + $0xb0] sm:$0xff]  ;;  %v40_v60 = vld [vmem:[%s3834_s1 + $0xb8] sm:$0xff]  ;;  %v41_v62 = vld [vmem:[%s3834_s1 + $0xc0] sm:$0xff] }
   0xf   :  { %v2211_v61 = vpack.c.bf16 %v40_v60, %v39_v59  ;;  %v2697_v2 = vld [vmem:[%s3834_s1 + $0x150] sm:$0xff]  ;;  %v42_v51 = vld [vmem:[%s3834_s1 + $0xc8] sm:$0xff]  ;;  %v44_v53 = vld [vmem:[%s3834_s1 + $0xd8] sm:$0xff]  ;;  %v3846_v59 = vmov 0   ;;  %p2496_p3 = por %p2495_p2, %p2494_p1 }
  0x10   :  { %2060 = vmatmul.mubr.msk.f32.vlgmr.msra.gmra.mrb[2].mxu0 %vm152_vm1, %v61_v13  ;;  %v468_v3 = vrot.slane %v2697_v2, %v2692_v1  ;;  %v474_v8 = vrot.slane %v2697_v2, %v2702_v4  ;;  %v480_v10 = vrot.slane %v2697_v2, %v2705_v5  ;;  %v45_v54 = vld [vmem:[%s3834_s1 + $0xe0] sm:$0xff]  ;;  %v47_v56 = vld [vmem:[%s3834_s1 + $0xf0] sm:$0xff]  ;;  %v48_v57 = vld [vmem:[%s3834_s1 + $0xf8] sm:$0xff]  ;;  %2262 = vset.pattern.permute.xlu0 %v3846_v59 }
  0x11   :  { %2077 = vmatprep.mubr.msk.f32.mxu0 %vm152_vm1, %v62_v21  ;;  %p2497_p4 = pnand %p2496_p3, %p2490_p0 }
  0xdf   :  { %v2054_v17 = vpop.f32.mrb[0].mxu0 }
  0xe0   :  { %330 = vrot.lane.b32.xlu1 %v2054_v17, %s2513_s8  ;;  %v143_v18 = vpop.f32.mrb[1].mxu0 }
  0xe3   :  { %v2061_v19 = vpop.f32.mrb[2].mxu0 }
  0xe4   :  { %v225_v20 = vpop.f32.mrb[3].mxu0 }
  0xe5   :  { %2070 = vmatprep.mubr.msk.f32.mxu1 %vm70_vm0, %v225_v20 }
  0xe6   :  { %2071 = vmatmul.mubr.msk.f32.vlgmr.msra.gmra.mrb[0].mxu1 %vm70_vm0, %v2061_v19 }
  0xe7   :  { %2128 = vmatprep.mubr.f32.mxu1 %v41_v62 }
 0x1b9   :  { %v2601_v22 = vpop.f32.mrb[0].mxu1 }
 0x1ba   :  { %3886 = vst [vmem:[#allocation5_spill] sm:$0xff] %v2601_v22  ;;  %v2603_v23 = vpop.f32.mrb[1].mxu1 }
 0x1bb   :  { %3887 = vst [vmem:[#allocation6_spill] sm:$0xff] %v2603_v23  ;;  %v2257_v24 = vpack.i.bf16 %v2601_v22, %v2603_v23  ;;  %v3914_v22 = vmov 10  }
 0x1bd   :  { %2258 = vrot.lane.b32.xlu0 %v2257_v24, %s2513_s8 }
 0x1c1   :  { %328 = vrot.lane.b32.xlu0 %v143_v18, %s2513_s8 }
 0x22f   :  { %v2259_v25 = vpop.permute.xlu0 %2258 }
 0x230   :  { %v2261_v26 = vunpack.i.h.bf16 %v2259_v25  ;;  %v2260_v27 = vunpack.i.l.bf16 %v2259_v25 }
 0x232   :  { %v324_v28 = vsel %vm323_vm2, %v143_v18, %v2260_v27  ;;  %v325_v29 = vsel %vm323_vm2, %v2054_v17, %v2261_v26  ;;  %v488_v17 = vrot.slane %v2697_v2, %v2712_v11  ;;  %v2717_v18 = vsub.s32 0, %v2689_v0 }
 0x233   :  { %v2179_v30 = vpack.c.bf16 %v325_v29, %v324_v28 }
 0x234   :  { %v496_v28 = vrot.slane %v2697_v2, %v2717_v18 }
 0x235   :  { %2180 = vmatprep.subr.bf16.mxu0 %v2179_v30 }
 0x236   :  { %2182 = vmatpush3.bf16.msra.mxu0 %v2179_v30 }
 0x237   :  { %2184 = vmatprep.subr.bf16.mxu0 %v2183_v40 }
 0x239   :  { %2078 = vmatmul.mubr.msk.f32.vlgmr.msra.gmra.mrb[4].mxu0 %vm152_vm1, %v63_v31 }
 0x23a   :  { %2080 = vmatprep.mubr.msk.f32.mxu0 %vm152_vm1, %v64_v32  ;;  %2186 = vmatpush3.bf16.msra.mxu0 %v2183_v40 }
 0x23b   :  { %2188 = vmatprep.subr.bf16.mxu0 %v2187_v43 }
 0x23d   :  { %2081 = vmatmul.mubr.msk.f32.gmra.mrb[6].mxu0 %vm152_vm1, %v65_v33 }
 0x23e   :  { %2083 = vmatprep.mubr.msk.f32.mxu0 %vm152_vm1, %v66_v34  ;;  %2190 = vmatpush3.bf16.msra.mxu0 %v2187_v43 }
 0x23f   :  { %2192 = vmatprep.subr.bf16.mxu0 %v2191_v46 }
 0x241   :  { %2084 = vmatmul.mubr.msk.f32.gmra.mrb[8].mxu0 %vm152_vm1, %v67_v35 }
 0x242   :  { %2086 = vmatprep.mubr.msk.f32.mxu0 %vm152_vm1, %v68_v36  ;;  %2194 = vmatpush3.bf16.msra.mxu0 %v2191_v46 }
 0x243   :  { %2196 = vmatprep.subr.bf16.mxu0 %v2195_v49 }
 0x245   :  { %2087 = vmatmul.mubr.msk.f32.gmra.mrb[10].mxu0 %vm152_vm1, %v69_v37 }
 0x246   :  { %2198 = vmatpush3.bf16.msra.mxu0 %v2195_v49 }
 0x247   :  { %2200 = vmatprep.subr.bf16.mxu0 %v2199_v52 }
 0x24a   :  { %2202 = vmatpush3.bf16.msra.mxu0 %v2199_v52  ;;  %v43_v52 = vld [vmem:[%s3834_s1 + $0xd0] sm:$0xff] }
 0x24b   :  { %2204 = vmatprep.subr.bf16.mxu0 %v2203_v55 }
 0x24e   :  { %2206 = vmatpush3.bf16.msra.mxu0 %v2203_v55  ;;  %v46_v55 = vld [vmem:[%s3834_s1 + $0xe8] sm:$0xff] }
 0x24f   :  { %2208 = vmatprep.subr.bf16.mxu0 %v2207_v58 }
 0x252   :  { %2210 = vmatpush3.bf16.msra.mxu0 %v2207_v58  ;;  %v3848_v58 = vmov 8  }
 0x253   :  { %2212 = vmatprep.subr.bf16.mxu0 %v2211_v61  ;;  %2263 = vset.pattern.permute.xlu1 %v3848_v58 }
 0x256   :  { %2214 = vmatpush3.bf16.msra.mxu0 %v2211_v61 }
 0x30c   :  { %v2079_v6 = vpop.f32.mrb[4].mxu0 }
 0x30d   :  { %v470_v7 = vmul.f32 %v2079_v6, %v468_v3  ;;  %v426_v9 = vpop.f32.mrb[5].mxu0 }
 0x30e   :  { %v469_v12 = vmul.f32 %v468_v3, %v426_v9 }
 0x30f   :  { %v476_v14 = vadd.f32 %v474_v8, %v470_v7  ;;  %v3860_v7 = vmov 9  }
 0x310   :  { %v2082_v13 = vpop.f32.mrb[6].mxu0  ;;  %v475_v19 = vadd.f32 %v474_v8, %v469_v12  ;;  %v3853_v8 = vmov 1   ;;  %v3865_v12 = vmov 2  }
 0x311   :  { %v482_v15 = vmul.f32 %v2082_v13, %v480_v10  ;;  %v436_v16 = vpop.f32.mrb[7].mxu0  ;;  %v3849_v13 = vmov 11  }
 0x312   :  { %v481_v20 = vmul.f32 %v480_v10, %v436_v16  ;;  %v3858_v10 = vmov 10   ;;  %v3862_v16 = vmov 4  }
 0x313   :  { %v484_v21 = vadd.f32 %v482_v15, %v476_v14  ;;  %v3854_v14 = vmov 3   ;;  %v3842_v15 = vmov 12  }
 0x314   :  { %v483_v24 = vadd.f32 %v481_v20, %v475_v19  ;;  %v2085_v25 = vpop.f32.mrb[8].mxu0  ;;  %v3867_v19 = vmov 5   ;;  %v3838_v20 = vmov 14  }
 0x315   :  { %v490_v26 = vmul.f32 %v2085_v25, %v488_v17  ;;  %v446_v27 = vpop.f32.mrb[9].mxu0 }
 0x316   :  { %v489_v29 = vmul.f32 %v488_v17, %v446_v27  ;;  %v3840_v17 = vmov 13   ;;  %v3844_v27 = vmov 15  }
 0x317   :  { %v492_v30 = vadd.f32 %v490_v26, %v484_v21  ;;  %v3856_v21 = vmov 6   ;;  %v3851_v26 = vmov 7  }
 0x318   :  { %v491_v31 = vadd.f32 %v489_v29, %v483_v24  ;;  %v2088_v32 = vpop.f32.mrb[10].mxu0  ;;  %v2850_v29 = vpop.permute.xlu1 %330 }
 0x319   :  { %v498_v33 = vmul.f32 %v2088_v32, %v496_v28  ;;  %v456_v34 = vpop.f32.mrb[11].mxu0  ;;  %3890 = vst [vmem:[#allocation9_spill] sm:$0xff] %v2850_v29 }
 0x31a   :  { %v497_v35 = vmul.f32 %v496_v28, %v456_v34 }
 0x31b   :  { %v500_v36 = vadd.f32 %v498_v33, %v492_v30  ;;  %v2852_v30 = vpop.permute.xlu0 %328 }
 0x31c   :  { %v499_v37 = vadd.f32 %v497_v35, %v491_v31  ;;  %3891 = vst [vmem:[#allocation10_spill] sm:$0xff] %v2852_v30  ;;  %v3915_v30 = vmov 6  }
 0x31d   :  { %v502_v38 = vsub.f32 0.0, %v500_v36 }
 0x31e   :  { %v501_v39 = vsub.f32 0.0, %v499_v37 }
 0x31f   :  { %v505_v40 = vmul.f32 1.442695, %v502_v38 }
 0x320   :  { %v503_v41 = vmul.f32 1.442695, %v501_v39 }
 0x321   :  { %2392 = vpow2.f32 %v505_v40 }
 0x322   :  { %2394 = vpow2.f32 %v503_v41 }
 0x32b   :  { %v2393_v42 = vpop.eup %2392 }
 0x32c   :  { %v2395_v43 = vpop.eup %2394  ;;  %v508_v44 = vadd.f32 1.0, %v2393_v42 }
 0x32d   :  { %v507_v45 = vadd.f32 1.0, %v2395_v43 }
 0x32e   :  { %2396 = vrcp.f32 %v508_v44 }
 0x32f   :  { %2398 = vrcp.f32 %v507_v45 }
 0x338   :  { %v2397_v46 = vpop.eup %2396 }
 0x339   :  { %v2399_v47 = vpop.eup %2398  ;;  %v2721_v48 = vmul.f32 %v2397_v46, %v500_v36 }
 0x33a   :  { %v2723_v49 = vmul.f32 %v2399_v47, %v499_v37 }
 0x33b   :  { %3888 = vst [vmem:[#allocation7_spill] sm:$0xff] %v2721_v48 }
 0x33c   :  { %3889 = vst [vmem:[#allocation8_spill] sm:$0xff] %v2723_v49  ;;  %2121 = vmatprep.mubr.f32.mxu0 %v2723_v49  ;;  %v2215_v50 = vpack.c.bf16 %v2721_v48, %v2723_v49 }
 0x33d   :  { %2122 = vmatmul.mubr.f32.vlgmr.msra.gmra.mrb[12].mxu0 %v2721_v48 }
 0x33e   :  { %2216 = vmatprep.subr.bf16.mxu1 %v2215_v50 }
 0x33f   :  { %2218 = vmatpush3.bf16.xpose.msra.mxu1 %v2215_v50 }
 0x346   :  { %2129 = vmatmul.mubr.f32.vlgmr.msra.gmra.mrb[2].mxu1 %v42_v51 }
 0x347   :  { %2131 = vmatprep.mubr.f32.mxu1 %v43_v52 }
 0x34a   :  { %2132 = vmatmul.mubr.f32.gmra.mrb[4].mxu1 %v44_v53 }
 0x34b   :  { %2134 = vmatprep.mubr.f32.mxu1 %v45_v54 }
 0x34e   :  { %2135 = vmatmul.mubr.f32.gmra.mrb[6].mxu1 %v46_v55 }
 0x34f   :  { %2137 = vmatprep.mubr.f32.mxu1 %v47_v56 }
 0x352   :  { %2138 = vmatmul.mubr.f32.gmra.mrb[8].mxu1 %v48_v57 }
 0x410   :  { %v2752_v60 = vpop.f32.mrb[12].mxu0 }
 0x411   :  { %v2754_v61 = vpop.f32.mrb[13].mxu0 }
 0x419   :  { %v2130_v62 = vpop.f32.mrb[2].mxu1 }
 0x41a   :  { %1009 = vperm.xlu1 %2263, %v2130_v62   ;;  %735 = vperm.xlu0 %2262, %v2130_v62   ;;  %v2756_v3 = vpop.f32.mrb[3].mxu1 }
 0x41d   :  { %v2758_v6 = vpop.f32.mrb[4].mxu1 }
 0x41e   :  { %2265 = vset.pattern.permute.xlu1 %v3860_v7  ;;  %2264 = vset.pattern.permute.xlu0 %v3853_v8  ;;  %v2762_v9 = vpop.f32.mrb[5].mxu1 }
 0x41f   :  { %1043 = vperm.xlu1 %2265, %v2130_v62   ;;  %771 = vperm.xlu0 %2264, %v2130_v62  }
 0x421   :  { %v2774_v24 = vpop.f32.mrb[6].mxu1 }
 0x422   :  { %v2776_v25 = vpop.f32.mrb[7].mxu1 }
 0x423   :  { %2267 = vset.pattern.permute.xlu1 %v3858_v10  ;;  %2266 = vset.pattern.permute.xlu0 %v3865_v12 }
 0x424   :  { %1077 = vperm.xlu1 %2267, %v2130_v62   ;;  %805 = vperm.xlu0 %2266, %v2130_v62  }
 0x425   :  { %v2808_v28 = vpop.f32.mrb[8].mxu1 }
 0x426   :  { %v2898_v41 = vpop.f32.mrb[9].mxu1 }
 0x428   :  { %2269 = vset.pattern.permute.xlu1 %v3849_v13  ;;  %2268 = vset.pattern.permute.xlu0 %v3854_v14 }
 0x429   :  { %1111 = vperm.xlu1 %2269, %v2130_v62   ;;  %839 = vperm.xlu0 %2268, %v2130_v62  }
 0x42d   :  { %2271 = vset.pattern.permute.xlu1 %v3842_v15  ;;  %2270 = vset.pattern.permute.xlu0 %v3862_v16 }
 0x42e   :  { %1145 = vperm.xlu1 %2271, %v2130_v62   ;;  %873 = vperm.xlu0 %2270, %v2130_v62  }
 0x432   :  { %2273 = vset.pattern.permute.xlu1 %v3840_v17  ;;  %2272 = vset.pattern.permute.xlu0 %v3867_v19 }
 0x433   :  { %1179 = vperm.xlu1 %2273, %v2130_v62   ;;  %907 = vperm.xlu0 %2272, %v2130_v62  }
 0x437   :  { %2275 = vset.pattern.permute.xlu1 %v3838_v20  ;;  %2274 = vset.pattern.permute.xlu0 %v3856_v21 }
 0x438   :  { %1213 = vperm.xlu1 %2275, %v2130_v62   ;;  %941 = vperm.xlu0 %2274, %v2130_v62  }
 0x43c   :  { %2276 = vset.pattern.permute.xlu1 %v3851_v26  ;;  %2277 = vset.pattern.permute.xlu0 %v3844_v27 }
 0x43d   :  { %975 = vperm.xlu1 %2276, %v2130_v62   ;;  %1247 = vperm.xlu0 %2277, %v2130_v62  }
 0x441   :  { %2278 = vset.pattern.permute.xlu1 %v3846_v59  ;;  %2279 = vset.pattern.permute.xlu0 %v3848_v58 }
 0x442   :  { %1005 = vperm.xlu0 %2279, %v2756_v3   ;;  %730 = vperm.xlu1 %2278, %v2756_v3  }
 0x446   :  { %2281 = vset.pattern.permute.xlu0 %v3860_v7  ;;  %2280 = vset.pattern.permute.xlu1 %v3853_v8 }
 0x447   :  { %1039 = vperm.xlu0 %2281, %v2756_v3   ;;  %767 = vperm.xlu1 %2280, %v2756_v3  }
 0x44b   :  { %2283 = vset.pattern.permute.xlu0 %v3858_v10  ;;  %2282 = vset.pattern.permute.xlu1 %v3865_v12 }
 0x44c   :  { %1073 = vperm.xlu0 %2283, %v2756_v3   ;;  %801 = vperm.xlu1 %2282, %v2756_v3  }
 0x450   :  { %2285 = vset.pattern.permute.xlu0 %v3849_v13  ;;  %2284 = vset.pattern.permute.xlu1 %v3854_v14 }
 0x451   :  { %1107 = vperm.xlu0 %2285, %v2756_v3   ;;  %835 = vperm.xlu1 %2284, %v2756_v3  }
 0x455   :  { %2287 = vset.pattern.permute.xlu0 %v3842_v15  ;;  %2286 = vset.pattern.permute.xlu1 %v3862_v16 }
 0x456   :  { %1141 = vperm.xlu0 %2287, %v2756_v3   ;;  %869 = vperm.xlu1 %2286, %v2756_v3  }
 0x45a   :  { %2289 = vset.pattern.permute.xlu0 %v3840_v17  ;;  %2288 = vset.pattern.permute.xlu1 %v3867_v19 }
 0x45b   :  { %1175 = vperm.xlu0 %2289, %v2756_v3   ;;  %903 = vperm.xlu1 %2288, %v2756_v3  }
 0x45f   :  { %2291 = vset.pattern.permute.xlu0 %v3838_v20  ;;  %2290 = vset.pattern.permute.xlu1 %v3856_v21 }
 0x460   :  { %1209 = vperm.xlu0 %2291, %v2756_v3   ;;  %937 = vperm.xlu1 %2290, %v2756_v3  }
 0x464   :  { %2292 = vset.pattern.permute.xlu0 %v3851_v26  ;;  %2293 = vset.pattern.permute.xlu1 %v3844_v27 }
 0x465   :  { %971 = vperm.xlu0 %2292, %v2756_v3   ;;  %1243 = vperm.xlu1 %2293, %v2756_v3  }
 0x469   :  { %2294 = vset.pattern.permute.xlu0 %v3846_v59  ;;  %2295 = vset.pattern.permute.xlu1 %v3853_v8 }
 0x46a   :  { %1366 = vperm.xlu1 %2295, %v2758_v6   ;;  %1337 = vperm.xlu0 %2294, %v2758_v6  }
 0x46e   :  { %2297 = vset.pattern.permute.xlu1 %v3848_v58  ;;  %2296 = vset.pattern.permute.xlu0 %v3865_v12 }
 0x46f   :  { %1555 = vperm.xlu1 %2297, %v2758_v6   ;;  %1393 = vperm.xlu0 %2296, %v2758_v6  }
 0x473   :  { %2300 = vset.pattern.permute.xlu1 %v3858_v10  ;;  %2298 = vset.pattern.permute.xlu0 %v3860_v7 }
 0x474   :  { %1609 = vperm.xlu1 %2300, %v2758_v6   ;;  %1582 = vperm.xlu0 %2298, %v2758_v6  }
 0x478   :  { %2301 = vset.pattern.permute.xlu1 %v3862_v16  ;;  %2299 = vset.pattern.permute.xlu0 %v3854_v14 }
 0x479   :  { %1447 = vperm.xlu1 %2301, %v2758_v6   ;;  %1420 = vperm.xlu0 %2299, %v2758_v6  }
 0x47d   :  { %2303 = vset.pattern.permute.xlu1 %v3867_v19  ;;  %2302 = vset.pattern.permute.xlu0 %v3849_v13 }
 0x47e   :  { %1474 = vperm.xlu1 %2303, %v2758_v6   ;;  %1636 = vperm.xlu0 %2302, %v2758_v6  }
 0x482   :  { %2305 = vset.pattern.permute.xlu1 %v3856_v21  ;;  %2304 = vset.pattern.permute.xlu0 %v3842_v15 }
 0x483   :  { %1501 = vperm.xlu1 %2305, %v2758_v6   ;;  %1663 = vperm.xlu0 %2304, %v2758_v6  }
 0x487   :  { %2307 = vset.pattern.permute.xlu1 %v3851_v26  ;;  %2306 = vset.pattern.permute.xlu0 %v3840_v17 }
 0x488   :  { %1528 = vperm.xlu1 %2307, %v2758_v6   ;;  %1690 = vperm.xlu0 %2306, %v2758_v6  }
 0x48c   :  { %2309 = vset.pattern.permute.xlu1 %v3844_v27  ;;  %2308 = vset.pattern.permute.xlu0 %v3838_v20 }
 0x48d   :  { %1744 = vperm.xlu1 %2309, %v2758_v6   ;;  %1717 = vperm.xlu0 %2308, %v2758_v6  }
 0x491   :  { %2310 = vset.pattern.permute.xlu1 %v3846_v59  ;;  %2311 = vset.pattern.permute.xlu0 %v3853_v8 }
 0x492   :  { %1362 = vperm.xlu0 %2311, %v2762_v9   ;;  %1332 = vperm.xlu1 %2310, %v2762_v9  }
 0x496   :  { %2313 = vset.pattern.permute.xlu0 %v3848_v58  ;;  %2312 = vset.pattern.permute.xlu1 %v3865_v12 }
 0x497   :  { %1551 = vperm.xlu0 %2313, %v2762_v9   ;;  %1389 = vperm.xlu1 %2312, %v2762_v9  }
 0x499   :  { %v2858_v31 = vpop.permute.xlu1 %1009  ;;  %v2860_v32 = vpop.permute.xlu0 %735 }
 0x49b   :  { %2316 = vset.pattern.permute.xlu0 %v3858_v10  ;;  %2314 = vset.pattern.permute.xlu1 %v3860_v7 }
 0x49c   :  { %1605 = vperm.xlu0 %2316, %v2762_v9   ;;  %1578 = vperm.xlu1 %2314, %v2762_v9  }
 0x49e   :  { %v2866_v33 = vpop.permute.xlu1 %1043  ;;  %v2868_v34 = vpop.permute.xlu0 %771 }
 0x4a0   :  { %2317 = vset.pattern.permute.xlu0 %v3862_v16  ;;  %2315 = vset.pattern.permute.xlu1 %v3854_v14 }
 0x4a1   :  { %1443 = vperm.xlu0 %2317, %v2762_v9   ;;  %1416 = vperm.xlu1 %2315, %v2762_v9  }
 0x4a3   :  { %v2874_v35 = vpop.permute.xlu1 %1077  ;;  %v2876_v36 = vpop.permute.xlu0 %805 }
 0x4a5   :  { %2319 = vset.pattern.permute.xlu0 %v3867_v19  ;;  %2318 = vset.pattern.permute.xlu1 %v3849_v13 }
 0x4a6   :  { %1470 = vperm.xlu0 %2319, %v2762_v9   ;;  %1632 = vperm.xlu1 %2318, %v2762_v9  }
 0x4a8   :  { %v2882_v37 = vpop.permute.xlu1 %1111  ;;  %v2884_v38 = vpop.permute.xlu0 %839 }
 0x4aa   :  { %2321 = vset.pattern.permute.xlu0 %v3856_v21  ;;  %2320 = vset.pattern.permute.xlu1 %v3842_v15 }
 0x4ab   :  { %1497 = vperm.xlu0 %2321, %v2762_v9   ;;  %1659 = vperm.xlu1 %2320, %v2762_v9  }
 0x4ad   :  { %v2890_v39 = vpop.permute.xlu1 %1145  ;;  %v2892_v40 = vpop.permute.xlu0 %873 }
 0x4af   :  { %2323 = vset.pattern.permute.xlu0 %v3851_v26  ;;  %2322 = vset.pattern.permute.xlu1 %v3840_v17 }
 0x4b0   :  { %1524 = vperm.xlu0 %2323, %v2762_v9   ;;  %1686 = vperm.xlu1 %2322, %v2762_v9  }
 0x4b2   :  { %v2900_v42 = vpop.permute.xlu1 %1179  ;;  %v2902_v43 = vpop.permute.xlu0 %907 }
 0x4b4   :  { %2325 = vset.pattern.permute.xlu0 %v3844_v27  ;;  %2324 = vset.pattern.permute.xlu1 %v3838_v20 }
 0x4b5   :  { %1740 = vperm.xlu0 %2325, %v2762_v9   ;;  %1713 = vperm.xlu1 %2324, %v2762_v9  }
 0x4b7   :  { %v2908_v44 = vpop.permute.xlu1 %1213  ;;  %v2910_v45 = vpop.permute.xlu0 %941 }
 0x4b9   :  { %2327 = vset.pattern.permute.xlu0 %v3848_v58  ;;  %2326 = vset.pattern.permute.xlu1 %v3846_v59 }
 0x4ba   :  { %1017 = vperm.xlu0 %2327, %v2774_v24   ;;  %745 = vperm.xlu1 %2326, %v2774_v24  }
 0x4bc   :  { %v2916_v46 = vpop.permute.xlu1 %975  ;;  %v2918_v47 = vpop.permute.xlu0 %1247 }
 0x4be   :  { %2329 = vset.pattern.permute.xlu0 %v3860_v7  ;;  %2328 = vset.pattern.permute.xlu1 %v3853_v8 }
 0x4bf   :  { %1051 = vperm.xlu0 %2329, %v2774_v24   ;;  %779 = vperm.xlu1 %2328, %v2774_v24  }
 0x4c1   :  { %v2924_v50 = vpop.permute.xlu0 %1005  ;;  %v2926_v51 = vpop.permute.xlu1 %730 }
 0x4c2   :  { %3892 = vst [vmem:[#allocation11_spill] sm:$0xff] %v2924_v50 }
 0x4c3   :  { %2331 = vset.pattern.permute.xlu0 %v3858_v10  ;;  %2330 = vset.pattern.permute.xlu1 %v3865_v12 }
 0x4c4   :  { %1085 = vperm.xlu0 %2331, %v2774_v24   ;;  %813 = vperm.xlu1 %2330, %v2774_v24  }
 0x4c6   :  { %v2932_v52 = vpop.permute.xlu0 %1039  ;;  %v2934_v53 = vpop.permute.xlu1 %767 }
 0x4c7   :  { %3893 = vst [vmem:[#allocation12_spill] sm:$0xff] %v2932_v52  ;;  %3894 = vst [vmem:[#allocation13_spill] sm:$0xff] %v2934_v53 }
 0x4c8   :  { %2333 = vset.pattern.permute.xlu0 %v3849_v13  ;;  %2332 = vset.pattern.permute.xlu1 %v3854_v14 }
 0x4c9   :  { %1119 = vperm.xlu0 %2333, %v2774_v24   ;;  %847 = vperm.xlu1 %2332, %v2774_v24  }
 0x4cb   :  { %v2940_v54 = vpop.permute.xlu0 %1073  ;;  %v2942_v55 = vpop.permute.xlu1 %801 }
 0x4cc   :  { %3895 = vst [vmem:[#allocation14_spill] sm:$0xff] %v2940_v54  ;;  %3896 = vst [vmem:[#allocation15_spill] sm:$0xff] %v2942_v55 }
 0x4cd   :  { %2335 = vset.pattern.permute.xlu0 %v3842_v15  ;;  %2334 = vset.pattern.permute.xlu1 %v3862_v16 }
 0x4ce   :  { %1153 = vperm.xlu0 %2335, %v2774_v24   ;;  %881 = vperm.xlu1 %2334, %v2774_v24  }
 0x4d0   :  { %v2948_v56 = vpop.permute.xlu0 %1107  ;;  %v2950_v57 = vpop.permute.xlu1 %835 }
 0x4d1   :  { %3897 = vst [vmem:[#allocation16_spill] sm:$0xff] %v2948_v56  ;;  %3898 = vst [vmem:[#allocation17_spill] sm:$0xff] %v2950_v57 }
 0x4d2   :  { %2337 = vset.pattern.permute.xlu0 %v3840_v17  ;;  %2336 = vset.pattern.permute.xlu1 %v3867_v19 }
 0x4d3   :  { %1187 = vperm.xlu0 %2337, %v2774_v24   ;;  %915 = vperm.xlu1 %2336, %v2774_v24  }
 0x4d5   :  { %v2956_v62 = vpop.permute.xlu0 %1141  ;;  %v2958_v3 = vpop.permute.xlu1 %869 }
 0x4d6   :  { %3899 = vst [vmem:[#allocation18_spill] sm:$0xff] %v2956_v62  ;;  %3900 = vst [vmem:[#allocation19_spill] sm:$0xff] %v2958_v3 }
 0x4d7   :  { %2339 = vset.pattern.permute.xlu0 %v3838_v20  ;;  %2338 = vset.pattern.permute.xlu1 %v3856_v21 }
 0x4d8   :  { %1221 = vperm.xlu0 %2339, %v2774_v24   ;;  %949 = vperm.xlu1 %2338, %v2774_v24  }
 0x4da   :  { %v2964_v6 = vpop.permute.xlu0 %1175  ;;  %v2966_v9 = vpop.permute.xlu1 %903 }
 0x4db   :  { %3901 = vst [vmem:[#allocation20_spill] sm:$0xff] %v2964_v6  ;;  %3902 = vst [vmem:[#allocation21_spill] sm:$0xff] %v2966_v9 }
 0x4dc   :  { %2340 = vset.pattern.permute.xlu0 %v3851_v26  ;;  %2341 = vset.pattern.permute.xlu1 %v3844_v27 }
 0x4dd   :  { %983 = vperm.xlu0 %2340, %v2774_v24   ;;  %1255 = vperm.xlu1 %2341, %v2774_v24  }
 0x4df   :  { %v2972_v63 = vpop.permute.xlu0 %1209  ;;  %v2974_v20 = vpop.permute.xlu1 %937 }
 0x4e0   :  { %3903 = vst [vmem:[#allocation22_spill] sm:$0xff] %v2972_v63  ;;  %3904 = vst [vmem:[#allocation23_spill] sm:$0xff] %v2974_v20  ;;  %v3929_v20 = vmov 12  }
 0x4e1   :  { %2359 = vset.pattern.permute.xlu0 %v3853_v8  ;;  %2342 = vset.pattern.permute.xlu1 %v3846_v59  ;;  %v2995_v59 = vsub.s32 5, %v2689_v0 }
 0x4e2   :  { %740 = vperm.xlu1 %2342, %v2776_v25   ;;  %1374 = vperm.xlu0 %2359, %v2808_v28  }
 0x4e3   :  { %v518_v26 = vrot.slane %v2697_v2, %v2995_v59 }
 0x4e4   :  { %v2980_v17 = vpop.permute.xlu0 %971  ;;  %v2982_v15 = vpop.permute.xlu1 %1243 }
 0x4e5   :  { %3905 = vst [vmem:[#allocation24_spill] sm:$0xff] %v2980_v17  ;;  %3906 = vst [vmem:[#allocation25_spill] sm:$0xff] %v2982_v15  ;;  %v591_v21 = vadd.f32 %v2752_v60, %v518_v26  ;;  %v3926_v15 = vmov 4  }
 0x4e6   :  { %2343 = vset.pattern.permute.xlu1 %v3848_v58  ;;  %2361 = vset.pattern.permute.xlu0 %v3848_v58 }
 0x4e7   :  { %1013 = vperm.xlu1 %2343, %v2776_v25   ;;  %1563 = vperm.xlu0 %2361, %v2808_v28   ;;  %v598_v2 = vmul.f32 1.442695, %v591_v21  ;;  %vm595_vm3 = vcmp.gt.f32.partialorder %v591_v21, 20.0 }
 0x4e9   :  { %v2988_v24 = vpop.permute.xlu1 %1366  ;;  %v2990_v27 = vpop.permute.xlu0 %1337  ;;  %2400 = vpow2.f32 %v598_v2  ;;  %v3923_v2 = vmov 15  }
 0x4ea   :  { %3907 = vst [vmem:[#allocation26_spill] sm:$0xff] %v2990_v27 }
 0x4eb   :  { %2344 = vset.pattern.permute.xlu1 %v3853_v8  ;;  %2364 = vset.pattern.permute.xlu0 %v3858_v10  ;;  %v586_v10 = vadd.f32 %v2754_v61, %v518_v26  ;;  %v3918_v26 = vmov 3  }
 0x4ec   :  { %775 = vperm.xlu1 %2344, %v2776_v25   ;;  %1617 = vperm.xlu0 %2364, %v2808_v28  }
 0x4ed   :  { %v596_v29 = vmul.f32 1.442695, %v586_v10  ;;  %vm594_vm4 = vcmp.gt.f32.partialorder %v586_v10, 20.0 }
 0x4ee   :  { %v2999_v58 = vpop.permute.xlu1 %1555  ;;  %v3001_v13 = vpop.permute.xlu0 %1393 }
 0x4ef   :  { %3908 = vst [vmem:[#allocation27_spill] sm:$0xff] %v2999_v58  ;;  %3909 = vst [vmem:[#allocation28_spill] sm:$0xff] %v3001_v13  ;;  %2402 = vpow2.f32 %v596_v29 }
 0x4f0   :  { %2345 = vset.pattern.permute.xlu1 %v3860_v7  ;;  %2365 = vset.pattern.permute.xlu0 %v3862_v16 }
 0x4f1   :  { %1047 = vperm.xlu1 %2345, %v2776_v25   ;;  %1455 = vperm.xlu0 %2365, %v2808_v28  }
 0x4f3   :  { %v3009_v8 = vpop.permute.xlu1 %1609  ;;  %v3011_v14 = vpop.permute.xlu0 %1582 }
 0x4f4   :  { %3910 = vst [vmem:[#allocation29_spill] sm:$0xff] %v3009_v8  ;;  %3911 = vst [vmem:[#allocation30_spill] sm:$0xff] %v3011_v14  ;;  %v2401_v29 = vpop.eup %2400 }
 0x4f5   :  { %2346 = vset.pattern.permute.xlu1 %v3865_v12  ;;  %2367 = vset.pattern.permute.xlu0 %v3867_v19  ;;  %v3919_v12 = vmov 7   ;;  %v601_v27 = vadd.f32 1.0, %v2401_v29  ;;  %v3932_v29 = vmov 5  }
 0x4f6   :  { %809 = vperm.xlu1 %2346, %v2776_v25   ;;  %1482 = vperm.xlu0 %2367, %v2808_v28  }
 0x4f7   :  { %2404 = vlog2.f32 %v601_v27  ;;  %v3935_v27 = vmov 13  }
 0x4f8   :  { %v3019_v7 = vpop.permute.xlu1 %1447  ;;  %v3021_v16 = vpop.permute.xlu0 %1420 }
 0x4f9   :  { %3912 = vst [vmem:[#allocation31_spill] sm:$0xff] %v3019_v7  ;;  %3913 = vst [vmem:[#allocation32_spill] sm:$0xff] %v3021_v16  ;;  %v3922_v16 = vmov 11  }
 0x4fa   :  { %2347 = vset.pattern.permute.xlu1 %v3914_v22  ;;  %2369 = vset.pattern.permute.xlu0 %v3915_v30 }
 0x4fb   :  { %1081 = vperm.xlu1 %2347, %v2776_v25   ;;  %1509 = vperm.xlu0 %2369, %v2808_v28  }
 0x4fd   :  { %v3027_v60 = vpop.permute.xlu1 %1474  ;;  %v3029_v61 = vpop.permute.xlu0 %1636 }
 0x4fe   :  { %3916 = vst [vmem:[#allocation33_spill] sm:$0xff] %v3027_v60  ;;  %3917 = vst [vmem:[#allocation34_spill] sm:$0xff] %v3029_v61  ;;  %v2403_v61 = vpop.eup %2402 }
 0x4ff   :  { %2348 = vset.pattern.permute.xlu1 %v3918_v26  ;;  %2371 = vset.pattern.permute.xlu0 %v3919_v12  ;;  %v600_v17 = vadd.f32 1.0, %v2403_v61 }
 0x500   :  { %843 = vperm.xlu1 %2348, %v2776_v25   ;;  %1536 = vperm.xlu0 %2371, %v2808_v28  }
 0x501   :  { %2406 = vlog2.f32 %v600_v17  ;;  %v2405_v62 = vpop.eup %2404 }
 0x502   :  { %v3035_v19 = vpop.permute.xlu1 %1501  ;;  %v3037_v23 = vpop.permute.xlu0 %1663  ;;  %v605_v17 = vmul.f32 0.6931472, %v2405_v62  ;;  %v3940_v62 = vmov 14  }
 0x503   :  { %3920 = vst [vmem:[#allocation35_spill] sm:$0xff] %v3035_v19  ;;  %3921 = vst [vmem:[#allocation36_spill] sm:$0xff] %v3037_v23 }
 0x504   :  { %2349 = vset.pattern.permute.xlu1 %v3922_v16  ;;  %2389 = vset.pattern.permute.xlu0 %v3923_v2 }
 0x505   :  { %1115 = vperm.xlu1 %2349, %v2776_v25   ;;  %1752 = vperm.xlu0 %2389, %v2808_v28  }
 0x507   :  { %v3043_v14 = vpop.permute.xlu1 %1528  ;;  %v3045_v13 = vpop.permute.xlu0 %1690 }
 0x508   :  { %3924 = vst [vmem:[#allocation37_spill] sm:$0xff] %v3043_v14  ;;  %3925 = vst [vmem:[#allocation38_spill] sm:$0xff] %v3045_v13 }
 0x509   :  { %2350 = vset.pattern.permute.xlu1 %v3926_v15 }
 0x50a   :  { %877 = vperm.xlu1 %2350, %v2776_v25  }
 0x50c   :  { %v3049_v23 = vpop.permute.xlu1 %1744  ;;  %v3051_v63 = vpop.permute.xlu0 %1717 }
 0x50d   :  { %3927 = vst [vmem:[#allocation39_spill] sm:$0xff] %v3049_v23  ;;  %3928 = vst [vmem:[#allocation40_spill] sm:$0xff] %v3051_v63  ;;  %v2407_v63 = vpop.eup %2406 }
 0x50e   :  { %2351 = vset.pattern.permute.xlu1 %v3929_v20  ;;  %v603_v3 = vmul.f32 0.6931472, %v2407_v63 }
 0x50f   :  { %1149 = vperm.xlu1 %2351, %v2776_v25  }
 0x511   :  { %v3055_v6 = vpop.permute.xlu0 %1362  ;;  %v3057_v9 = vpop.permute.xlu1 %1332 }
 0x512   :  { %3930 = vst [vmem:[#allocation41_spill] sm:$0xff] %v3055_v6  ;;  %3931 = vst [vmem:[#allocation42_spill] sm:$0xff] %v3057_v9  ;;  %v3072_v9 = vsel %vm595_vm3, %v591_v21, %v605_v17  ;;  %v3089_v21 = vld [vmem:[%s3834_s1 + $0x148] sm:$0xff] }
 0x513   :  { %2352 = vset.pattern.permute.xlu1 %v3932_v29  ;;  %v3083_v63 = vrot.slane %v3072_v9, %v2717_v18  ;;  %v3125_v57 = vrot.slane %v3072_v9, %v2705_v5  ;;  %v3140_v19 = vrot.slane %v3072_v9, %v2692_v1 }
 0x514   :  { %911 = vperm.xlu1 %2352, %v2776_v25  }
 0x515   :  { %3945 = vst [vmem:[#allocation53_spill] sm:$0xff] %v3125_v57  ;;  %v1067_v15 = vmul.f32 %v3125_v57, %v3089_v21  ;;  %3948 = vst [vmem:[#allocation56_spill] sm:$0xff] %v3140_v19  ;;  %v1101_v55 = vmul.f32 %v3140_v19, %v3089_v21 }
 0x516   :  { %v3061_v61 = vpop.permute.xlu0 %1551  ;;  %v3063_v13 = vpop.permute.xlu1 %1389 }
 0x517   :  { %3933 = vst [vmem:[#allocation43_spill] sm:$0xff] %v3061_v61  ;;  %3934 = vst [vmem:[#allocation44_spill] sm:$0xff] %v3063_v13  ;;  %v3075_v61 = vsel %vm594_vm4, %v586_v10, %v603_v3  ;;  %v1070_v60 = vmul.f32 1.442695, %v1067_v15  ;;  %v3181_v15 = vsub.s32 6, %v2689_v0 }
 0x518   :  { %2353 = vset.pattern.permute.xlu1 %v3935_v27  ;;  %v3093_v17 = vrot.slane %v3075_v61, %v2717_v18  ;;  %v1104_v19 = vmul.f32 1.442695, %v1101_v55 }
 0x519   :  { %1183 = vperm.xlu1 %2353, %v2776_v25  }
 0x51b   :  { %v3067_v23 = vpop.permute.xlu0 %1605  ;;  %v3069_v6 = vpop.permute.xlu1 %1578 }
 0x51c   :  { %3936 = vst [vmem:[#allocation45_spill] sm:$0xff] %v3067_v23  ;;  %3937 = vst [vmem:[#allocation46_spill] sm:$0xff] %v3069_v6  ;;  %v723_v23 = vmul.f32 %v3093_v17, %v3089_v21  ;;  %v3112_v6 = vrot.slane %v3075_v61, %v2712_v11 }
 0x51d   :  { %2354 = vset.pattern.permute.xlu1 %v3915_v30 }
 0x51e   :  { %945 = vperm.xlu1 %2354, %v2776_v25   ;;  %v726_v56 = vmul.f32 1.442695, %v723_v23 }
 0x520   :  { %v3077_v13 = vpop.permute.xlu0 %1443  ;;  %v3079_v29 = vpop.permute.xlu1 %1416 }
 0x521   :  { %3938 = vst [vmem:[#allocation47_spill] sm:$0xff] %v3077_v13  ;;  %3939 = vst [vmem:[#allocation48_spill] sm:$0xff] %v3079_v29  ;;  %v999_v13 = vmul.f32 %v3083_v63, %v3089_v21  ;;  %v3107_v29 = vrot.slane %v3072_v9, %v2712_v11 }
 0x522   :  { %2355 = vset.pattern.permute.xlu1 %v3940_v62 }
 0x523   :  { %1217 = vperm.xlu1 %2355, %v2776_v25   ;;  %v1033_v14 = vmul.f32 %v3107_v29, %v3089_v21 }
 0x525   :  { %v3096_v10 = vpop.permute.xlu0 %1470  ;;  %v3098_v3 = vpop.permute.xlu1 %1632 }
 0x526   :  { %3941 = vst [vmem:[#allocation49_spill] sm:$0xff] %v3096_v10  ;;  %3942 = vst [vmem:[#allocation50_spill] sm:$0xff] %v3098_v3  ;;  %v1002_v10 = vmul.f32 1.442695, %v999_v13  ;;  %v3130_v13 = vrot.slane %v3075_v61, %v2705_v5 }
 0x527   :  { %2356 = vset.pattern.permute.xlu1 %v3919_v12  ;;  %v761_v12 = vmul.f32 %v3112_v6, %v3089_v21 }
 0x528   :  { %979 = vperm.xlu1 %2356, %v2776_v25   ;;  %2408 = vpow2.f32 %v1002_v10  ;;  %v795_v10 = vmul.f32 %v3130_v13, %v3089_v21 }
 0x529   :  { %2410 = vpow2.f32 %v726_v56  ;;  %v3147_v56 = vrot.slane %v3075_v61, %v2692_v1 }
 0x52a   :  { %v3114_v3 = vpop.permute.xlu0 %1497  ;;  %v3116_v30 = vpop.permute.xlu1 %1659 }
 0x52b   :  { %3943 = vst [vmem:[#allocation51_spill] sm:$0xff] %v3114_v3  ;;  %3944 = vst [vmem:[#allocation52_spill] sm:$0xff] %v3116_v30  ;;  %v1036_v30 = vmul.f32 1.442695, %v1033_v14  ;;  %v3951_v14 = vlaneseq  ;;  %v829_v7 = vmul.f32 %v3147_v56, %v3089_v21 }
 0x52c   :  { %2357 = vset.pattern.permute.xlu1 %v3923_v2  ;;  %v764_v2 = vmul.f32 1.442695, %v761_v12  ;;  %3950 = vst [vmem:[#allocation57_spill] sm:$0xff] %v3147_v56 }
 0x52d   :  { %1251 = vperm.xlu1 %2357, %v2776_v25   ;;  %v3949_v25 = vmov 0   ;;  %v3151_v12 = vand.u32 127, %v3951_v14  ;;  %2412 = vpow2.f32 %v1036_v30  ;;  %v798_v14 = vmul.f32 1.442695, %v795_v10 }
 0x52e   :  { %2414 = vpow2.f32 %v764_v2  ;;  %v3171_v30 = vrot.slane %v3072_v9, %v2702_v4  ;;  %v3184_v2 = vsub.s32 7, %v2689_v0  ;;  %v832_v56 = vmul.f32 1.442695, %v829_v7 }
 0x52f   :  { %v3132_v23 = vpop.permute.xlu0 %1524  ;;  %v3134_v3 = vpop.permute.xlu1 %1686  ;;  %vm717_vm5 = vcmp.lt.s32.totalorder %v3151_v12, 64  ;;  %2416 = vpow2.f32 %v1070_v60  ;;  %v3198_v0 = vrot.slane %v3072_v9, %v2995_v59  ;;  %v3210_v7 = vrot.slane %v3075_v61, %v2995_v59 }
 0x530   :  { %3946 = vst [vmem:[#allocation54_spill] sm:$0xff] %v3132_v23  ;;  %3947 = vst [vmem:[#allocation55_spill] sm:$0xff] %v3134_v3  ;;  %v3155_v23 = vmul.f32 %v3072_v9, %v2721_v48  ;;  %v3159_v3 = vmul.f32 %v3075_v61, %v2723_v49  ;;  %v3955_v48 = vmov 2   ;;  %v3176_v49 = vrot.slane %v3075_v61, %v2702_v4 }
 0x531   :  { %2358 = vset.pattern.permute.xlu1 %v3949_v25  ;;  %3954 = vst [vmem:[#allocation60_spill] sm:$0xff] %v3171_v30  ;;  %2418 = vpow2.f32 %v798_v14  ;;  %v1135_v58 = vmul.f32 %v3171_v30, %v3089_v21  ;;  %3959 = vst [vmem:[#allocation64_spill] sm:$0xff] %v3198_v0 }
 0x532   :  { %1347 = vperm.xlu1 %2358, %v2808_v28   ;;  %3956 = vst [vmem:[#allocation61_spill] sm:$0xff] %v3176_v49  ;;  %v3192_v52 = vrot.slane %v3159_v3, %v2717_v18  ;;  %v863_v55 = vmul.f32 %v3176_v49, %v3089_v21  ;;  %2420 = vpow2.f32 %v1104_v19  ;;  %v897_v19 = vmul.f32 %v3210_v7, %v3089_v21 }
 0x533   :  { %2422 = vpow2.f32 %v832_v56 }
 0x534   :  { %v3161_v54 = vpop.permute.xlu0 %1740  ;;  %v3163_v22 = vpop.permute.xlu1 %1713  ;;  %3958 = vst [vmem:[#allocation63_spill] sm:$0xff] %v3192_v52 }
 0x535   :  { %3952 = vst [vmem:[#allocation58_spill] sm:$0xff] %v3161_v54  ;;  %3953 = vst [vmem:[#allocation59_spill] sm:$0xff] %v3163_v22  ;;  %v2409_v54 = vpop.eup %2408  ;;  %v3188_v22 = vrot.slane %v3155_v23, %v2717_v18 }
 0x536   :  { %2360 = vset.pattern.permute.xlu1 %v3955_v48  ;;  %v2411_v10 = vpop.eup %2410  ;;  %v1299_v14 = vmul.f32 0.0, %v2409_v54  ;;  %v3960_v48 = vmov 9  }
 0x537   :  { %1401 = vperm.xlu1 %2360, %v2808_v28   ;;  %3957 = vst [vmem:[#allocation62_spill] sm:$0xff] %v3188_v22  ;;  %v1267_v57 = vmul.f32 0.0, %v2411_v10  ;;  %v1138_v10 = vmul.f32 1.442695, %v1135_v58 }
 0x539   :  { %v1018_v8 = vpop.permute.xlu0 %1017  ;;  %v746_v53 = vpop.permute.xlu1 %745  ;;  %2424 = vpow2.f32 %v1138_v10 }
 0x53a   :  { %v1021_v50 = vsel %vm717_vm5, %v2858_v31, %v1018_v8  ;;  %v749_v18 = vsel %vm717_vm5, %v2860_v32, %v746_v53  ;;  %v3218_v8 = vrot.slane %v3155_v23, %v2712_v11  ;;  %v3222_v31 = vrot.slane %v3159_v3, %v2712_v11 }
 0x53b   :  { %v1027_v60 = vmul.f32 %v3188_v22, %v1021_v50  ;;  %v755_v30 = vmul.f32 %v3192_v52, %v749_v18  ;;  %2362 = vset.pattern.permute.xlu1 %v3960_v48  ;;  %v3226_v32 = vrot.slane %v3072_v9, %v3181_v15  ;;  %v2413_v50 = vpop.eup %2412  ;;  %v1169_v18 = vmul.f32 %v3198_v0, %v3089_v21 }
 0x53c   :  { %1590 = vperm.xlu1 %2362, %v2808_v28   ;;  %v2415_v49 = vpop.eup %2414  ;;  %v866_v11 = vmul.f32 1.442695, %v863_v55  ;;  %v3238_v52 = vrot.slane %v3075_v61, %v3181_v15 }
 0x53d   :  { %3961 = vst [vmem:[#allocation65_spill] sm:$0xff] %v3226_v32  ;;  %v3228_v53 = vadd.f32 %v1299_v14, %v1027_v60  ;;  %v3230_v54 = vadd.f32 %v1267_v57, %v755_v30  ;;  %v3254_v14 = vrot.slane %v3155_v23, %v2705_v5 }
 0x53e   :  { %v1052_v48 = vpop.permute.xlu0 %1051  ;;  %v780_v22 = vpop.permute.xlu1 %779  ;;  %2426 = vpow2.f32 %v866_v11  ;;  %v931_v10 = vmul.f32 %v3238_v52, %v3089_v21 }
 0x53f   :  { %3962 = vst [vmem:[#allocation66_spill] sm:$0xff] %v3230_v54  ;;  %v1055_v57 = vsel %vm717_vm5, %v2866_v33, %v1052_v48  ;;  %v1303_v58 = vmul.f32 %v2413_v50, %v3228_v53  ;;  %v783_v30 = vsel %vm717_vm5, %v2868_v34, %v780_v22  ;;  %v1271_v56 = vmul.f32 %v2415_v49, %v3230_v54  ;;  %v2417_v49 = vpop.eup %2416 }
 0x540   :  { %v1061_v55 = vmul.f32 %v3218_v8, %v1055_v57  ;;  %v789_v60 = vmul.f32 %v3222_v31, %v783_v30  ;;  %2363 = vset.pattern.permute.xlu1 %v3918_v26  ;;  %v3258_v48 = vrot.slane %v3159_v3, %v2705_v5  ;;  %v1203_v22 = vmul.f32 %v3226_v32, %v3089_v21  ;;  %v2419_v30 = vpop.eup %2418 }
 0x541   :  { %1428 = vperm.xlu1 %2363, %v2808_v28   ;;  %v1172_v50 = vmul.f32 1.442695, %v1169_v18  ;;  %v3268_v57 = vrot.slane %v3075_v61, %v3184_v2  ;;  %v900_v5 = vmul.f32 1.442695, %v897_v19  ;;  %v3274_v32 = vrot.slane %v3072_v9, %v3184_v2  ;;  %v2421_v9 = vpop.eup %2420 }
 0x542   :  { %v3262_v33 = vadd.f32 %v1303_v58, %v1061_v55  ;;  %v3264_v34 = vadd.f32 %v1271_v56, %v789_v60  ;;  %v1206_v55 = vmul.f32 1.442695, %v1203_v22  ;;  %v2423_v60 = vpop.eup %2422 }
 0x543   :  { %v1086_v54 = vpop.permute.xlu0 %1085  ;;  %v814_v0 = vpop.permute.xlu1 %813  ;;  %2428 = vpow2.f32 %v1172_v50 }
 0x544   :  { %3963 = vst [vmem:[#allocation67_spill] sm:$0xff] %v3262_v33  ;;  %v1089_v18 = vsel %vm717_vm5, %v2874_v35, %v1086_v54  ;;  %v1307_v58 = vmul.f32 %v2417_v49, %v3262_v33  ;;  %v817_v61 = vsel %vm717_vm5, %v2876_v36, %v814_v0  ;;  %v1275_v11 = vmul.f32 %v2419_v30, %v3264_v34 }
 0x545   :  { %v1095_v19 = vmul.f32 %v3254_v14, %v1089_v18  ;;  %v823_v56 = vmul.f32 %v3258_v48, %v817_v61  ;;  %2366 = vset.pattern.permute.xlu1 %v3922_v16  ;;  %v3290_v35 = vrot.slane %v3155_v23, %v2692_v1  ;;  %v3294_v54 = vrot.slane %v3159_v3, %v2692_v1 }
 0x546   :  { %1644 = vperm.xlu1 %2366, %v2808_v28   ;;  %2430 = vpow2.f32 %v900_v5  ;;  %v934_v18 = vmul.f32 1.442695, %v931_v10  ;;  %v965_v61 = vmul.f32 %v3268_v57, %v3089_v21  ;;  %v1237_v33 = vmul.f32 %v3274_v32, %v3089_v21  ;;  %v3318_v21 = vld [vmem:[%s3834_s1 + $0x140] sm:$0xff] }
 0x547   :  { %v3296_v36 = vadd.f32 %v1307_v58, %v1095_v19  ;;  %v3298_v0 = vadd.f32 %v1275_v11, %v823_v56  ;;  %v3323_v11 = vrot.slane %v3155_v23, %v2702_v4  ;;  %v3331_v56 = vrot.slane %v3159_v3, %v2702_v4 }
 0x548   :  { %v1120_v49 = vpop.permute.xlu0 %1119  ;;  %v848_v30 = vpop.permute.xlu1 %847  ;;  %2432 = vpow2.f32 %v1206_v55 }
 0x549   :  { %v1123_v1 = vsel %vm717_vm5, %v2882_v37, %v1120_v49  ;;  %v1311_v58 = vmul.f32 %v2421_v9, %v3296_v36  ;;  %v851_v22 = vsel %vm717_vm5, %v2884_v38, %v848_v30  ;;  %v1279_v50 = vmul.f32 %v2423_v60, %v3298_v0  ;;  %v2425_v37 = vpop.eup %2424 }
 0x54a   :  { %v1129_v5 = vmul.f32 %v3290_v35, %v1123_v1  ;;  %v857_v10 = vmul.f32 %v3294_v54, %v851_v22  ;;  %2368 = vset.pattern.permute.xlu1 %v3929_v20  ;;  %v2427_v9 = vpop.eup %2426  ;;  %2434 = vpow2.f32 %v934_v18  ;;  %v968_v30 = vmul.f32 1.442695, %v965_v61 }
 0x54b   :  { %1671 = vperm.xlu1 %2368, %v2808_v28   ;;  %v1240_v1 = vmul.f32 1.442695, %v1237_v33  ;;  %v722_v22 = vmul.f32 %v3093_v17, %v3318_v21  ;;  %v3349_v17 = vrot.slane %v3155_v23, %v2995_v59 }
 0x54c   :  { %v3325_v38 = vadd.f32 %v1311_v58, %v1129_v5  ;;  %v3327_v19 = vadd.f32 %v1279_v50, %v857_v10  ;;  %2436 = vpow2.f32 %v968_v30 }
 0x54d   :  { %v1154_v60 = vpop.permute.xlu0 %1153  ;;  %v882_v49 = vpop.permute.xlu1 %881  ;;  %2438 = vpow2.f32 %v1240_v1 }
 0x54e   :  { %v1157_v58 = vsel %vm717_vm5, %v2890_v39, %v1154_v60  ;;  %v1315_v50 = vmul.f32 %v2425_v37, %v3325_v38  ;;  %v885_v4 = vsel %vm717_vm5, %v2892_v40, %v882_v49  ;;  %v1283_v55 = vmul.f32 %v2427_v9, %v3327_v19  ;;  %v2429_v39 = vpop.eup %2428 }
 0x54f   :  { %v1163_v5 = vmul.f32 %v3323_v11, %v1157_v58  ;;  %v891_v18 = vmul.f32 %v3331_v56, %v885_v4  ;;  %2370 = vset.pattern.permute.xlu1 %v3935_v27  ;;  %v3355_v40 = vrot.slane %v3159_v3, %v2995_v59  ;;  %v724_v60 = vmul.f32 1.442695, %v722_v22 }
 0x550   :  { %1698 = vperm.xlu1 %2370, %v2808_v28   ;;  %v2431_v10 = vpop.eup %2430  ;;  %v760_v49 = vmul.f32 %v3112_v6, %v3318_v21  ;;  %v998_v58 = vmul.f32 %v3083_v63, %v3318_v21 }
 0x551   :  { %v3351_v33 = vadd.f32 %v1315_v50, %v1163_v5  ;;  %v3357_v61 = vadd.f32 %v1283_v55, %v891_v18  ;;  %2440 = vpow2.f32 %v724_v60 }
 0x552   :  { %v1188_v37 = vpop.permute.xlu0 %1187  ;;  %v916_v9 = vpop.permute.xlu1 %915 }
 0x553   :  { %v1191_v50 = vsel %vm717_vm5, %v2900_v42, %v1188_v37  ;;  %v1319_v59 = vmul.f32 %v2429_v39, %v3351_v33  ;;  %v919_v30 = vsel %vm717_vm5, %v2902_v43, %v916_v9  ;;  %v1287_v4 = vmul.f32 %v2431_v10, %v3357_v61  ;;  %v2433_v6 = vpop.eup %2432 }
 0x554   :  { %v1197_v1 = vmul.f32 %v3349_v17, %v1191_v50  ;;  %v925_v22 = vmul.f32 %v3355_v40, %v919_v30  ;;  %2372 = vset.pattern.permute.xlu1 %v3940_v62  ;;  %v3379_v42 = vrot.slane %v3155_v23, %v3181_v15  ;;  %v2435_v43 = vpop.eup %2434  ;;  %v3385_v39 = vrot.slane %v3159_v3, %v3181_v15 }
 0x555   :  { %1725 = vperm.xlu1 %2372, %v2808_v28   ;;  %v762_v10 = vmul.f32 1.442695, %v760_v49  ;;  %v1000_v37 = vmul.f32 1.442695, %v998_v58  ;;  %v1032_v28 = vmul.f32 %v3107_v29, %v3318_v21 }
 0x556   :  { %v3375_v63 = vadd.f32 %v1319_v59, %v1197_v1  ;;  %v3381_v55 = vadd.f32 %v1287_v4, %v925_v22  ;;  %v2437_v29 = vpop.eup %2436 }
 0x557   :  { %v1222_v5 = vpop.permute.xlu0 %1221  ;;  %v950_v18 = vpop.permute.xlu1 %949  ;;  %2442 = vpow2.f32 %v1000_v37 }
 0x558   :  { %v1225_v9 = vsel %vm717_vm5, %v2908_v44, %v1222_v5  ;;  %v1323_v50 = vmul.f32 %v2433_v6, %v3375_v63  ;;  %v953_v60 = vsel %vm717_vm5, %v2910_v45, %v950_v18  ;;  %v1291_v59 = vmul.f32 %v2435_v43, %v3381_v55  ;;  %v2439_v4 = vpop.eup %2438 }
 0x559   :  { %v1231_v30 = vmul.f32 %v3379_v42, %v1225_v9  ;;  %v959_v49 = vmul.f32 %v3385_v39, %v953_v60  ;;  %2373 = vset.pattern.permute.xlu1 %v3949_v25  ;;  %v3407_v45 = vrot.slane %v3159_v3, %v3184_v2  ;;  %v3411_v6 = vrot.slane %v3155_v23, %v3184_v2 }
 0x55a   :  { %1342 = vperm.xlu1 %2373, %v2898_v41   ;;  %2444 = vpow2.f32 %v762_v10  ;;  %v1034_v25 = vmul.f32 1.442695, %v1032_v28  ;;  %v3964_v23 = vmov 1   ;;  %v794_v10 = vmul.f32 %v3130_v13, %v3318_v21  ;;  %v3965_v13 = vld [vmem:[#allocation63_spill] sm:$0xff] }
 0x55b   :  { %v3401_v58 = vadd.f32 %v1323_v50, %v1231_v30  ;;  %v3403_v44 = vadd.f32 %v1291_v59, %v959_v49 }
 0x55c   :  { %v984_v1 = vpop.permute.xlu0 %983  ;;  %v1256_v22 = vpop.permute.xlu1 %1255  ;;  %2446 = vpow2.f32 %v1034_v25  ;;  %v796_v49 = vmul.f32 1.442695, %v794_v10 }
 0x55d   :  { %v987_v43 = vsel %vm717_vm5, %v2916_v46, %v984_v1  ;;  %v1259_v5 = vsel %vm717_vm5, %v2918_v47, %v1256_v22  ;;  %v1295_v18 = vmul.f32 %v2437_v29, %v3403_v44  ;;  %v1327_v3 = vmul.f32 %v2439_v4, %v3401_v58  ;;  %v2441_v46 = vpop.eup %2440 }
 0x55e   :  { %v993_v37 = vmul.f32 %v3407_v45, %v987_v43  ;;  %v1265_v9 = vmul.f32 %v3411_v6, %v1259_v5  ;;  %2374 = vset.pattern.permute.xlu1 %v3964_v23  ;;  %v3966_v1 = vmov 2   ;;  %v1266_v22 = vmul.f32 0.0, %v2441_v46  ;;  %v3967_v43 = vld [vmem:[#allocation53_spill] sm:$0xff] }
 0x55f   :  { %1370 = vperm.xlu1 %2374, %v2898_v41   ;;  %v1066_v25 = vmul.f32 %v3967_v43, %v3318_v21  ;;  %2448 = vpow2.f32 %v796_v49  ;;  %v3972_v49 = vld [vmem:[#allocation57_spill] sm:$0xff] }
 0x560   :  { %v3427_v28 = vadd.f32 %v1295_v18, %v993_v37  ;;  %v3429_v50 = vadd.f32 %v1327_v3, %v1265_v9  ;;  %v3968_v37 = vld [vmem:[#allocation11_spill] sm:$0xff] }
 0x561   :  { %v741_v47 = vpop.permute.xlu1 %740  ;;  %v1375_v60 = vpop.permute.xlu0 %1374  ;;  %v3969_v9 = vld [vmem:[#allocation27_spill] sm:$0xff]  ;;  %v1068_v46 = vmul.f32 1.442695, %v1066_v25  ;;  %v3973_v25 = vld [vmem:[#allocation13_spill] sm:$0xff] }
 0x562   :  { %v748_v59 = vsel %vm717_vm5, %v2926_v51, %v741_v47  ;;  %v1378_v30 = vsel %vm717_vm5, %v2988_v24, %v1375_v60  ;;  %v2443_v5 = vpop.eup %2442  ;;  %v3970_v47 = vld [vmem:[#allocation62_spill] sm:$0xff] }
 0x563   :  { %v754_v29 = vmul.f32 %v3965_v13, %v748_v59  ;;  %v3439_v4 = vmul.f32 %v1378_v30, %v3264_v34  ;;  %2375 = vset.pattern.permute.xlu1 %v3966_v1  ;;  %v3971_v30 = vmov 8   ;;  %v1298_v13 = vmul.f32 0.0, %v2443_v5 }
 0x564   :  { %1397 = vperm.xlu1 %2375, %v2898_v41   ;;  %v2445_v18 = vpop.eup %2444  ;;  %2450 = vpow2.f32 %v1068_v46  ;;  %v3976_v46 = vld [vmem:[#allocation56_spill] sm:$0xff] }
 0x565   :  { %v3445_v51 = vadd.f32 %v1266_v22, %v754_v29  ;;  %v828_v29 = vmul.f32 %v3972_v49, %v3318_v21 }
 0x566   :  { %v1014_v3 = vpop.permute.xlu1 %1013  ;;  %v1564_v24 = vpop.permute.xlu0 %1563 }
 0x567   :  { %v1020_v34 = vsel %vm717_vm5, %v3968_v37, %v1014_v3  ;;  %v1567_v23 = vsel %vm717_vm5, %v3969_v9, %v1564_v24  ;;  %v1270_v10 = vmul.f32 %v2445_v18, %v3445_v51  ;;  %v2447_v22 = vpop.eup %2446  ;;  %v830_v37 = vmul.f32 1.442695, %v828_v29  ;;  %v3978_v29 = vld [vmem:[#allocation31_spill] sm:$0xff] }
 0x568   :  { %v1026_v60 = vmul.f32 %v3970_v47, %v1020_v34  ;;  %v3456_v59 = vmul.f32 %v1567_v23, %v3228_v53  ;;  %2376 = vset.pattern.permute.xlu1 %v3971_v30  ;;  %v3974_v53 = vld [vmem:[#allocation29_spill] sm:$0xff]  ;;  %v3975_v23 = vmov 9   ;;  %v1100_v47 = vmul.f32 %v3976_v46, %v3318_v21  ;;  %v3980_v46 = vld [vmem:[#allocation15_spill] sm:$0xff] }
 0x569   :  { %1559 = vperm.xlu1 %2376, %v2898_v41   ;;  %v2449_v30 = vpop.eup %2448  ;;  %2452 = vpow2.f32 %v830_v37 }
 0x56a   :  { %v3462_v1 = vadd.f32 %v1298_v13, %v1026_v60 }
 0x56b   :  { %v776_v43 = vpop.permute.xlu1 %775  ;;  %v1618_v3 = vpop.permute.xlu0 %1617 }
 0x56c   :  { %v782_v18 = vsel %vm717_vm5, %v3973_v25, %v776_v43  ;;  %v1621_v24 = vsel %vm717_vm5, %v3974_v53, %v1618_v3  ;;  %v1302_v5 = vmul.f32 %v2447_v22, %v3462_v1  ;;  %v3977_v22 = vld [vmem:[#allocation12_spill] sm:$0xff]  ;;  %v1102_v3 = vmul.f32 1.442695, %v1100_v47  ;;  %v3981_v47 = vld [vmem:[#allocation33_spill] sm:$0xff] }
 0x56d   :  { %v788_v34 = vmul.f32 %v3222_v31, %v782_v18  ;;  %v3473_v9 = vmul.f32 %v1621_v24, %v3296_v36  ;;  %2377 = vset.pattern.permute.xlu1 %v3975_v23  ;;  %v3979_v18 = vld [vmem:[#allocation61_spill] sm:$0xff] }
 0x56e   :  { %1586 = vperm.xlu1 %2377, %v2898_v41   ;;  %v862_v53 = vmul.f32 %v3979_v18, %v3318_v21  ;;  %v2451_v37 = vpop.eup %2450  ;;  %2454 = vpow2.f32 %v1102_v3  ;;  %v3984_v18 = vld [vmem:[#allocation14_spill] sm:$0xff] }
 0x56f   :  { %v3479_v60 = vadd.f32 %v1270_v10, %v788_v34 }
 0x570   :  { %v1048_v13 = vpop.permute.xlu1 %1047  ;;  %v1456_v49 = vpop.permute.xlu0 %1455 }
 0x571   :  { %v1054_v31 = vsel %vm717_vm5, %v3977_v22, %v1048_v13  ;;  %v1459_v36 = vsel %vm717_vm5, %v3978_v29, %v1456_v49  ;;  %v1274_v43 = vmul.f32 %v2449_v30, %v3479_v60  ;;  %v864_v30 = vmul.f32 1.442695, %v862_v53  ;;  %v3983_v22 = vld [vmem:[#allocation60_spill] sm:$0xff]  ;;  %v3985_v53 = vld [vmem:[#allocation35_spill] sm:$0xff] }
 0x572   :  { %v1060_v25 = vmul.f32 %v3218_v8, %v1054_v31  ;;  %v3490_v10 = vmul.f32 %v1459_v36, %v3357_v61  ;;  %2378 = vset.pattern.permute.xlu1 %v3918_v26  ;;  %v3982_v49 = vmov 10   ;;  %v1134_v31 = vmul.f32 %v3983_v22, %v3318_v21  ;;  %v3988_v22 = vld [vmem:[#allocation37_spill] sm:$0xff] }
 0x573   :  { %1424 = vperm.xlu1 %2378, %v2898_v41   ;;  %v2453_v36 = vpop.eup %2452  ;;  %2456 = vpow2.f32 %v864_v30 }
 0x574   :  { %v3496_v24 = vadd.f32 %v1302_v5, %v1060_v25 }
 0x575   :  { %v810_v34 = vpop.permute.xlu1 %809  ;;  %v1483_v23 = vpop.permute.xlu0 %1482 }
 0x576   :  { %v816_v8 = vsel %vm717_vm5, %v3980_v46, %v810_v34  ;;  %v1486_v61 = vsel %vm717_vm5, %v3981_v47, %v1483_v23  ;;  %v1306_v26 = vmul.f32 %v2451_v37, %v3496_v24  ;;  %v1136_v34 = vmul.f32 1.442695, %v1134_v31 }
 0x577   :  { %v822_v13 = vmul.f32 %v3258_v48, %v816_v8  ;;  %v3507_v5 = vmul.f32 %v1486_v61, %v3381_v55  ;;  %2379 = vset.pattern.permute.xlu1 %v3982_v49  ;;  %v3986_v46 = vmov 4   ;;  %v896_v8 = vmul.f32 %v3210_v7, %v3318_v21  ;;  %v3987_v49 = vld [vmem:[#allocation17_spill] sm:$0xff] }
 0x578   :  { %1613 = vperm.xlu1 %2379, %v2898_v41   ;;  %v2455_v61 = vpop.eup %2454  ;;  %2458 = vpow2.f32 %v1136_v34  ;;  %v3990_v34 = vld [vmem:[#allocation16_spill] sm:$0xff] }
 0x579   :  { %v3513_v29 = vadd.f32 %v1274_v43, %v822_v13 }
 0x57a   :  { %v1082_v3 = vpop.permute.xlu1 %1081  ;;  %v1510_v25 = vpop.permute.xlu0 %1509 }
 0x57b   :  { %v1088_v48 = vsel %vm717_vm5, %v3984_v18, %v1082_v3  ;;  %v1513_v55 = vsel %vm717_vm5, %v3985_v53, %v1510_v25  ;;  %v1278_v37 = vmul.f32 %v2453_v36, %v3513_v29  ;;  %v898_v36 = vmul.f32 1.442695, %v896_v8  ;;  %v3989_v3 = vld [vmem:[#allocation64_spill] sm:$0xff] }
 0x57c   :  { %v1094_v23 = vmul.f32 %v3254_v14, %v1088_v48  ;;  %v3524_v43 = vmul.f32 %v1513_v55, %v3403_v44  ;;  %2380 = vset.pattern.permute.xlu1 %v3986_v46  ;;  %v1168_v25 = vmul.f32 %v3989_v3, %v3318_v21 }
 0x57d   :  { %1451 = vperm.xlu1 %2380, %v2898_v41   ;;  %v2457_v48 = vpop.eup %2456  ;;  %2460 = vpow2.f32 %v898_v36 }
 0x57e   :  { %v3530_v47 = vadd.f32 %v1306_v26, %v1094_v23  ;;  %v3991_v23 = vld [vmem:[#allocation39_spill] sm:$0xff]  ;;  %v1170_v46 = vmul.f32 1.442695, %v1168_v25 }
 0x57f   :  { %v844_v30 = vpop.permute.xlu1 %843  ;;  %v1537_v13 = vpop.permute.xlu0 %1536 }
 0x580   :  { %v850_v14 = vsel %vm717_vm5, %v3987_v49, %v844_v30  ;;  %v1540_v44 = vsel %vm717_vm5, %v3988_v22, %v1537_v13  ;;  %v1310_v31 = vmul.f32 %v2455_v61, %v3530_v47  ;;  %v3992_v61 = vmov 5   ;;  %v3993_v22 = vld [vmem:[#allocation19_spill] sm:$0xff] }
 0x581   :  { %v856_v7 = vmul.f32 %v3294_v54, %v850_v14  ;;  %v3541_v26 = vmul.f32 %v1540_v44, %v3427_v28  ;;  %2381 = vset.pattern.permute.xlu1 %v3922_v16  ;;  %v930_v30 = vmul.f32 %v3238_v52, %v3318_v21  ;;  %2462 = vpow2.f32 %v1170_v46  ;;  %v3994_v52 = vld [vmem:[#allocation65_spill] sm:$0xff] }
 0x582   :  { %1640 = vperm.xlu1 %2381, %v2898_v41   ;;  %v2459_v49 = vpop.eup %2458  ;;  %v3997_v46 = vld [vmem:[#allocation21_spill] sm:$0xff] }
 0x583   :  { %v3547_v18 = vadd.f32 %v1278_v37, %v856_v7  ;;  %v1202_v7 = vmul.f32 %v3994_v52, %v3318_v21 }
 0x584   :  { %v1116_v53 = vpop.permute.xlu1 %1115  ;;  %v1753_v55 = vpop.permute.xlu0 %1752 }
 0x585   :  { %v1122_v54 = vsel %vm717_vm5, %v3990_v34, %v1116_v53  ;;  %v1756_v28 = vsel %vm717_vm5, %v3991_v23, %v1753_v55  ;;  %v1282_v16 = vmul.f32 %v2457_v48, %v3547_v18  ;;  %v3995_v48 = vld [vmem:[#allocation18_spill] sm:$0xff]  ;;  %v1204_v34 = vmul.f32 1.442695, %v1202_v7  ;;  %v4000_v7 = vld [vmem:[#allocation23_spill] sm:$0xff] }
 0x586   :  { %v1128_v8 = vmul.f32 %v3290_v35, %v1122_v54  ;;  %v3558_v37 = vmul.f32 %v1756_v28, %v3429_v50  ;;  %2382 = vset.pattern.permute.xlu1 %v3992_v61  ;;  %v932_v50 = vmul.f32 1.442695, %v930_v30  ;;  %v964_v54 = vmul.f32 %v3268_v57, %v3318_v21 }
 0x587   :  { %1478 = vperm.xlu1 %2382, %v2898_v41   ;;  %v2461_v3 = vpop.eup %2460  ;;  %v1236_v57 = vmul.f32 %v3274_v32, %v3318_v21 }
 0x588   :  { %v3564_v13 = vadd.f32 %v1310_v31, %v1128_v8  ;;  %2464 = vpow2.f32 %v932_v50  ;;  %v966_v30 = vmul.f32 1.442695, %v964_v54 }
 0x589   :  { %v878_v14 = vpop.permute.xlu1 %877  ;;  %2466 = vpow2.f32 %v1204_v34  ;;  %v4001_v34 = vld [vmem:[#allocation22_spill] sm:$0xff] }
 0x58a   :  { %v884_v44 = vsel %vm717_vm5, %v3993_v22, %v878_v14  ;;  %v1314_v35 = vmul.f32 %v2459_v49, %v3564_v13  ;;  %2468 = vpow2.f32 %v966_v30 }
 0x58b   :  { %v890_v36 = vmul.f32 %v3331_v56, %v884_v44  ;;  %2383 = vset.pattern.permute.xlu1 %v3929_v20  ;;  %v3996_v20 = vmov 6   ;;  %v2463_v28 = vpop.eup %2462  ;;  %v3998_v44 = vld [vmem:[#allocation20_spill] sm:$0xff] }
 0x58c   :  { %1667 = vperm.xlu1 %2383, %v2898_v41  }
 0x58d   :  { %v3575_v31 = vadd.f32 %v1282_v16, %v890_v36  ;;  %v1238_v36 = vmul.f32 1.442695, %v1236_v57 }
 0x58e   :  { %v1150_v25 = vpop.permute.xlu1 %1149 }
 0x58f   :  { %v1156_v53 = vsel %vm717_vm5, %v3995_v48, %v1150_v25  ;;  %v1286_v55 = vmul.f32 %v2461_v3, %v3575_v31  ;;  %2470 = vpow2.f32 %v1238_v36 }
 0x590   :  { %v1162_v56 = vmul.f32 %v3323_v11, %v1156_v53  ;;  %2384 = vset.pattern.permute.xlu1 %v3996_v20 }
 0x591   :  { %1505 = vperm.xlu1 %2384, %v2898_v41  }
 0x592   :  { %v3586_v23 = vadd.f32 %v1314_v35, %v1162_v56  ;;  %v2465_v14 = vpop.eup %2464 }
 0x593   :  { %v912_v16 = vpop.permute.xlu1 %911  ;;  %v2467_v21 = vpop.eup %2466 }
 0x594   :  { %v918_v8 = vsel %vm717_vm5, %v3997_v46, %v912_v16  ;;  %v1318_v61 = vmul.f32 %v2463_v28, %v3586_v23  ;;  %v2469_v53 = vpop.eup %2468  ;;  %v4002_v28 = vmov 15   ;;  %v4003_v46 = vld [vmem:[#allocation24_spill] sm:$0xff] }
 0x595   :  { %v924_v11 = vmul.f32 %v3355_v40, %v918_v8  ;;  %2385 = vset.pattern.permute.xlu1 %v3935_v27  ;;  %v3999_v27 = vmov 7  }
 0x596   :  { %1694 = vperm.xlu1 %2385, %v2898_v41  }
 0x597   :  { %v3597_v49 = vadd.f32 %v1286_v55, %v924_v11 }
 0x598   :  { %v1184_v22 = vpop.permute.xlu1 %1183 }
 0x599   :  { %v1190_v35 = vsel %vm717_vm5, %v3998_v44, %v1184_v22  ;;  %v1290_v50 = vmul.f32 %v2465_v14, %v3597_v49  ;;  %v4004_v22 = vld [vmem:[#allocation25_spill] sm:$0xff] }
 0x59a   :  { %v1196_v40 = vmul.f32 %v3349_v17, %v1190_v35  ;;  %2386 = vset.pattern.permute.xlu1 %v3999_v27 }
 0x59b   :  { %1532 = vperm.xlu1 %2386, %v2898_v41  }
 0x59c   :  { %v3606_v32 = vadd.f32 %v1318_v61, %v1196_v40 }
 0x59d   :  { %v946_v52 = vpop.permute.xlu1 %945 }
 0x59e   :  { %v952_v3 = vsel %vm717_vm5, %v4000_v7, %v946_v52  ;;  %v1322_v25 = vmul.f32 %v2467_v21, %v3606_v32  ;;  %v4005_v21 = vld [vmem:[#allocation26_spill] sm:$0xff] }
 0x59f   :  { %v958_v48 = vmul.f32 %v3385_v39, %v952_v3  ;;  %2387 = vset.pattern.permute.xlu1 %v3940_v62  ;;  %v2471_v62 = vpop.eup %2470  ;;  %v4006_v7 = vld [vmem:[#allocation66_spill] sm:$0xff]  ;;  %v53_v3 = vld [vmem:[%s3834_s1 + $0x120] sm:$0xff] }
 0x5a0   :  { %1721 = vperm.xlu1 %2387, %v2898_v41  }
 0x5a1   :  { %v3615_v17 = vadd.f32 %v1290_v50, %v958_v48  ;;  %v52_v50 = vld [vmem:[%s3834_s1 + $0x118] sm:$0xff] }
 0x5a2   :  { %v1218_v55 = vpop.permute.xlu1 %1217 }
 0x5a3   :  { %v1224_v56 = vsel %vm717_vm5, %v4001_v34, %v1218_v55  ;;  %v1294_v20 = vmul.f32 %v2469_v53, %v3615_v17  ;;  %v4007_v55 = vld [vmem:[#allocation28_spill] sm:$0xff] }
 0x5a4   :  { %v1230_v54 = vmul.f32 %v3379_v42, %v1224_v56  ;;  %2388 = vset.pattern.permute.xlu1 %v4002_v28  ;;  %v49_v42 = vld [vmem:[%s3834_s1 + $0x100] sm:$0xff] }
 0x5a5   :  { %1748 = vperm.xlu1 %2388, %v2898_v41   ;;  %v50_v41 = vld [vmem:[%s3834_s1 + $0x108] sm:$0xff] }
 0x5a6   :  { %v3624_v39 = vadd.f32 %v1322_v25, %v1230_v54  ;;  %v2219_v57 = vpack.c.bf16 %v50_v41, %v49_v42  ;;  %v54_v25 = vld [vmem:[%s3834_s1 + $0x128] sm:$0xff]  ;;  %v56_v54 = vld [vmem:[%s3834_s1 + $0x138] sm:$0xff] }
 0x5a7   :  { %v980_v16 = vpop.permute.xlu1 %979  ;;  %v2227_v48 = vpack.c.bf16 %v54_v25, %v53_v3  ;;  %v4014_v3 = vld [vmem:[#allocation40_spill] sm:$0xff] }
 0x5a8   :  { %v986_v8 = vsel %vm717_vm5, %v4003_v46, %v980_v16  ;;  %v1326_v61 = vmul.f32 %v2471_v62, %v3624_v39  ;;  %2220 = vmatprep.subr.bf16.mxu1 %v2219_v57  ;;  %v4008_v16 = vld [vmem:[#allocation30_spill] sm:$0xff] }
 0x5a9   :  { %v992_v30 = vmul.f32 %v3407_v45, %v986_v8  ;;  %2222 = vmatpush3.bf16.xpose.msra.mxu1 %v2219_v57  ;;  %v51_v45 = vld [vmem:[%s3834_s1 + $0x110] sm:$0xff]  ;;  %v4009_v8 = vld [vmem:[#allocation67_spill] sm:$0xff] }
 0x5aa   :  { %v2223_v36 = vpack.c.bf16 %v52_v50, %v51_v45  ;;  %v4012_v45 = vld [vmem:[#allocation36_spill] sm:$0xff] }
 0x5ab   :  { %v3637_v11 = vadd.f32 %v1294_v20, %v992_v30  ;;  %v55_v20 = vld [vmem:[%s3834_s1 + $0x130] sm:$0xff] }
 0x5ac   :  { %v1252_v14 = vpop.permute.xlu1 %1251  ;;  %2224 = vmatprep.subr.bf16.mxu1 %v2223_v36  ;;  %v2231_v62 = vpack.c.bf16 %v56_v54, %v55_v20 }
 0x5ad   :  { %v1258_v44 = vsel %vm717_vm5, %v4004_v22, %v1252_v14  ;;  %v4011_v14 = vld [vmem:[#allocation34_spill] sm:$0xff] }
 0x5ae   :  { %v1264_v35 = vmul.f32 %v3411_v6, %v1258_v44 }
 0x5b0   :  { %v3649_v40 = vadd.f32 %v1326_v61, %v1264_v35 }
 0x5b1   :  { %v1348_v27 = vpop.permute.xlu1 %1347  ;;  %2226 = vmatpush3.bf16.xpose.msra.mxu1 %v2223_v36 }
 0x5b2   :  { %v1351_v52 = vsel %vm717_vm5, %v4005_v21, %v1348_v27  ;;  %2228 = vmatprep.subr.bf16.mxu1 %v2227_v48 }
 0x5b3   :  { %v1353_v6 = vmul.f32 %v1351_v52, %v4006_v7 }
 0x5b6   :  { %v1402_v53 = vpop.permute.xlu1 %1401 }
 0x5b7   :  { %v1405_v34 = vsel %vm717_vm5, %v4007_v55, %v1402_v53  ;;  %v4015_v53 = vld [vmem:[#allocation42_spill] sm:$0xff] }
 0x5b8   :  { %v1407_v56 = vmul.f32 %v1405_v34, %v3298_v0  ;;  %v4010_v0 = vld [vmem:[#allocation32_spill] sm:$0xff] }
 0x5b9   :  { %2230 = vmatpush3.bf16.xpose.msra.mxu1 %v2227_v48 }
 0x5ba   :  { %2232 = vmatprep.subr.bf16.mxu1 %v2231_v62 }
 0x5bb   :  { %v1591_v28 = vpop.permute.xlu1 %1590 }
 0x5bc   :  { %v1594_v46 = vsel %vm717_vm5, %v4008_v16, %v1591_v28 }
 0x5bd   :  { %v1596_v61 = vmul.f32 %v1594_v46, %v4009_v8 }
 0x5c0   :  { %v1429_v30 = vpop.permute.xlu1 %1428 }
 0x5c1   :  { %v1432_v42 = vsel %vm717_vm5, %v4010_v0, %v1429_v30  ;;  %2234 = vmatpush3.bf16.xpose.msra.mxu1 %v2231_v62  ;;  %v4017_v0 = vld [vmem:[#allocation44_spill] sm:$0xff] }
 0x5c2   :  { %v3679_v41 = vmul.f32 %v1432_v42, %v3327_v19  ;;  %v4013_v19 = vld [vmem:[#allocation38_spill] sm:$0xff] }
 0x5c5   :  { %v1645_v57 = vpop.permute.xlu1 %1644 }
 0x5c6   :  { %v1648_v22 = vsel %vm717_vm5, %v4011_v14, %v1645_v57 }
 0x5c7   :  { %v3685_v44 = vmul.f32 %v1648_v22, %v3325_v38 }
 0x5ca   :  { %v1672_v35 = vpop.permute.xlu1 %1671 }
 0x5cb   :  { %v1675_v50 = vsel %vm717_vm5, %v4012_v45, %v1672_v35 }
 0x5cc   :  { %v3691_v36 = vmul.f32 %v1675_v50, %v3351_v33  ;;  %v4018_v50 = vld [vmem:[#allocation43_spill] sm:$0xff] }
 0x5cf   :  { %v1699_v27 = vpop.permute.xlu1 %1698 }
 0x5d0   :  { %v1702_v21 = vsel %vm717_vm5, %v4013_v19, %v1699_v27 }
 0x5d1   :  { %v3697_v52 = vmul.f32 %v1702_v21, %v3375_v63  ;;  %v4016_v63 = vld [vmem:[#allocation41_spill] sm:$0xff] }
 0x5d4   :  { %v1726_v7 = vpop.permute.xlu1 %1725 }
 0x5d5   :  { %v1729_v38 = vsel %vm717_vm5, %v4014_v3, %v1726_v7 }
 0x5d6   :  { %v3703_v25 = vmul.f32 %v1729_v38, %v3401_v58 }
 0x5d9   :  { %v1343_v48 = vpop.permute.xlu1 %1342 }
 0x5da   :  { %v1350_v33 = vsel %vm717_vm5, %v4015_v53, %v1343_v48 }
 0x5db   :  { %v1352_v55 = vmul.f32 %v1350_v33, %v3445_v51  ;;  %v4019_v33 = vld [vmem:[#allocation46_spill] sm:$0xff] }
 0x5dd   :  { %v1354_v34 = vadd.f32 %v1353_v6, %v1352_v55 }
 0x5de   :  { %v1371_v20 = vpop.permute.xlu1 %1370 }
 0x5df   :  { %v1355_v54 = vrot.slane %v1354_v34, 4  ;;  %v1377_v28 = vsel %vm717_vm5, %v4016_v63, %v1371_v20 }
 0x5e0   :  { %v1379_v62 = vmul.f32 %v1377_v28, %v3479_v60 }
 0x5e1   :  { %v1356_v16 = vadd.f32 %v1355_v54, %v1354_v34 }
 0x5e2   :  { %v1381_v58 = vadd.f32 %v3439_v4, %v1379_v62 }
 0x5e3   :  { %v1357_v46 = vrot.slane %v1356_v16, 2  ;;  %v1398_v8 = vpop.permute.xlu1 %1397 }
 0x5e4   :  { %v1382_v30 = vrot.slane %v1381_v58, 4  ;;  %v1404_v42 = vsel %vm717_vm5, %v4017_v0, %v1398_v8 }
 0x5e5   :  { %v1406_v51 = vmul.f32 %v1404_v42, %v3513_v29  ;;  %v1358_v6 = vadd.f32 %v1357_v46, %v1356_v16  ;;  %v4020_v46 = vld [vmem:[#allocation48_spill] sm:$0xff] }
 0x5e6   :  { %v1383_v57 = vadd.f32 %v1382_v30, %v1381_v58 }
 0x5e7   :  { %v1408_v14 = vadd.f32 %v1407_v56, %v1406_v51  ;;  %v1359_v4 = vrot.slane %v1358_v6, 1 }
 0x5e8   :  { %v1384_v22 = vrot.slane %v1383_v57, 2  ;;  %v1560_v35 = vpop.permute.xlu1 %1559 }
 0x5e9   :  { %v1409_v45 = vrot.slane %v1408_v14, 4  ;;  %v1566_v60 = vsel %vm717_vm5, %v4018_v50, %v1560_v35  ;;  %v1360_v48 = vadd.f32 %v1359_v4, %v1358_v6 }
 0x5ea   :  { %v1385_v27 = vadd.f32 %v1384_v22, %v1383_v57  ;;  %v1568_v19 = vmul.f32 %v1566_v60, %v3462_v1 }
 0x5eb   :  { %v1410_v21 = vadd.f32 %v1409_v45, %v1408_v14  ;;  %v4021_v14 = vld [vmem:[#allocation45_spill] sm:$0xff] }
 0x5ec   :  { %v1386_v7 = vrot.slane %v1385_v27, 1  ;;  %v1570_v3 = vadd.f32 %v3456_v59, %v1568_v19 }
 0x5ed   :  { %v1411_v29 = vrot.slane %v1410_v21, 2  ;;  %v1587_v38 = vpop.permute.xlu1 %1586 }
 0x5ee   :  { %v1387_v56 = vadd.f32 %v1386_v7, %v1385_v27  ;;  %v1571_v53 = vrot.slane %v1570_v3, 4  ;;  %v1593_v55 = vsel %vm717_vm5, %v4019_v33, %v1587_v38 }
 0x5ef   :  { %v1412_v34 = vadd.f32 %v1411_v29, %v1410_v21  ;;  %v1595_v20 = vmul.f32 %v1593_v55, %v3496_v24 }
 0x5f0   :  { %v1767_v54 = vsel %vm1766_vm6, %v1360_v48, %v1387_v56  ;;  %v1572_v1 = vadd.f32 %v1571_v53, %v1570_v3  ;;  %v4022_v3 = vld [vmem:[#allocation47_spill] sm:$0xff] }
 0x5f1   :  { %v1413_v63 = vrot.slane %v1412_v34, 1  ;;  %v1597_v28 = vadd.f32 %v1596_v61, %v1595_v20 }
 0x5f2   :  { %v1573_v59 = vrot.slane %v1572_v1, 2  ;;  %v1425_v62 = vpop.permute.xlu1 %1424 }
 0x5f3   :  { %v1414_v16 = vadd.f32 %v1413_v63, %v1412_v34  ;;  %v1598_v58 = vrot.slane %v1597_v28, 4  ;;  %v1431_v8 = vsel %vm717_vm5, %v4020_v46, %v1425_v62 }
 0x5f4   :  { %v1433_v30 = vmul.f32 %v1431_v8, %v3547_v18  ;;  %v1574_v42 = vadd.f32 %v1573_v59, %v1572_v1  ;;  %v4024_v59 = vld [vmem:[#allocation6_spill] sm:$0xff] }
 0x5f5   :  { %v1769_v0 = vsel %vm1768_vm7, %v1767_v54, %v1414_v16  ;;  %v1599_v24 = vadd.f32 %v1598_v58, %v1597_v28  ;;  %v4023_v54 = vld [vmem:[#allocation50_spill] sm:$0xff] }
 0x5f6   :  { %v1435_v51 = vadd.f32 %v3679_v41, %v1433_v30  ;;  %v1575_v35 = vrot.slane %v1574_v42, 1 }
 0x5f7   :  { %v1600_v6 = vrot.slane %v1599_v24, 2  ;;  %v1614_v57 = vpop.permute.xlu1 %1613 }
 0x5f8   :  { %v1436_v61 = vrot.slane %v1435_v51, 4  ;;  %v1620_v22 = vsel %vm717_vm5, %v4021_v14, %v1614_v57  ;;  %v1576_v21 = vadd.f32 %v1575_v35, %v1574_v42 }
 0x5f9   :  { %v1601_v45 = vadd.f32 %v1600_v6, %v1599_v24  ;;  %v1622_v50 = vmul.f32 %v1620_v22, %v3530_v47  ;;  %v4026_v6 = vld [vmem:[#allocation49_spill] sm:$0xff] }
 0x5fa   :  { %v1437_v60 = vadd.f32 %v1436_v61, %v1435_v51 }
 0x5fb   :  { %v1602_v4 = vrot.slane %v1601_v45, 1  ;;  %v1624_v18 = vadd.f32 %v3473_v9, %v1622_v50 }
 0x5fc   :  { %v1438_v27 = vrot.slane %v1437_v60, 2  ;;  %v1452_v19 = vpop.permute.xlu1 %1451 }
 0x5fd   :  { %v1603_v7 = vadd.f32 %v1602_v4, %v1601_v45  ;;  %v1625_v41 = vrot.slane %v1624_v18, 4  ;;  %v1458_v29 = vsel %vm717_vm5, %v4022_v3, %v1452_v19 }
 0x5fe   :  { %v1439_v38 = vadd.f32 %v1438_v27, %v1437_v60  ;;  %v1460_v48 = vmul.f32 %v1458_v29, %v3575_v31  ;;  %v4025_v31 = vld [vmem:[#allocation10_spill] sm:$0xff] }
 0x5ff   :  { %v1780_v56 = vsel %vm1766_vm6, %v1576_v21, %v1603_v7  ;;  %v1626_v53 = vadd.f32 %v1625_v41, %v1624_v18  ;;  %v3752_v62 = vsel %vm323_vm2, %v4025_v31, %v4024_v59  ;;  %v4027_v18 = vld [vmem:[#allocation52_spill] sm:$0xff]  ;;  %v4029_v7 = vld [vmem:[#allocation9_spill] sm:$0xff] }
 0x600   :  { %v1440_v47 = vrot.slane %v1439_v38, 1  ;;  %v1462_v33 = vadd.f32 %v3490_v10, %v1460_v48  ;;  %v1795_v42 = vsub.f32 0.0, %v3752_v62 }
 0x601   :  { %v1627_v9 = vrot.slane %v1626_v53, 2  ;;  %v1641_v55 = vpop.permute.xlu1 %1640 }
 0x602   :  { %v1441_v34 = vadd.f32 %v1440_v47, %v1439_v38  ;;  %v1463_v20 = vrot.slane %v1462_v33, 4  ;;  %v1647_v1 = vsel %vm717_vm5, %v4023_v54, %v1641_v55 }
 0x603   :  { %v1628_v63 = vadd.f32 %v1627_v9, %v1626_v53  ;;  %v1649_v28 = vmul.f32 %v1647_v1, %v3564_v13  ;;  %v4030_v9 = vld [vmem:[#allocation51_spill] sm:$0xff] }
 0x604   :  { %v1771_v16 = vsel %vm1770_vm8, %v1769_v0, %v1441_v34  ;;  %v1464_v10 = vadd.f32 %v1463_v20, %v1462_v33 }
 0x605   :  { %v1629_v58 = vrot.slane %v1628_v63, 1  ;;  %v1651_v46 = vadd.f32 %v3685_v44, %v1649_v28  ;;  %v1797_v44 = vmul.f32 1.442695, %v1795_v42 }
 0x606   :  { %v1465_v8 = vrot.slane %v1464_v10, 2  ;;  %v1479_v30 = vpop.permute.xlu1 %1478 }
 0x607   :  { %v1630_v24 = vadd.f32 %v1629_v58, %v1628_v63  ;;  %v1652_v51 = vrot.slane %v1651_v46, 4  ;;  %v1485_v13 = vsel %vm717_vm5, %v4026_v6, %v1479_v30  ;;  %2472 = vpow2.f32 %v1797_v44 }
 0x608   :  { %v1466_v57 = vadd.f32 %v1465_v8, %v1464_v10  ;;  %v1487_v61 = vmul.f32 %v1485_v13, %v3597_v49  ;;  %v4028_v49 = vld [vmem:[#allocation5_spill] sm:$0xff]  ;;  %v4031_v10 = vld [vmem:[#allocation55_spill] sm:$0xff] }
 0x609   :  { %v1781_v14 = vsel %vm1768_vm7, %v1780_v56, %v1630_v24  ;;  %v1653_v0 = vadd.f32 %v1652_v51, %v1651_v46  ;;  %v3770_v41 = vsel %vm323_vm2, %v4029_v7, %v4028_v49 }
 0x60a   :  { %v1467_v22 = vrot.slane %v1466_v57, 1  ;;  %v1489_v35 = vadd.f32 %v3507_v5, %v1487_v61  ;;  %v1796_v53 = vsub.f32 0.0, %v3770_v41  ;;  %v4032_v61 = vld [vmem:[#allocation54_spill] sm:$0xff] }
 0x60b   :  { %v1654_v45 = vrot.slane %v1653_v0, 2  ;;  %v1668_v50 = vpop.permute.xlu1 %1667 }
 0x60c   :  { %v1468_v60 = vadd.f32 %v1467_v22, %v1466_v57  ;;  %v1490_v4 = vrot.slane %v1489_v35, 4  ;;  %v1674_v27 = vsel %vm717_vm5, %v4027_v18, %v1668_v50 }
 0x60d   :  { %v1655_v19 = vadd.f32 %v1654_v45, %v1653_v0  ;;  %v1676_v21 = vmul.f32 %v1674_v27, %v3586_v23  ;;  %v4033_v27 = vld [vmem:[#allocation59_spill] sm:$0xff] }
 0x60e   :  { %v1491_v3 = vadd.f32 %v1490_v4, %v1489_v35  ;;  %v1773_v5 = vsel %vm1772_vm9, %v1771_v16, %v1468_v60 }
 0x60f   :  { %v1656_v29 = vrot.slane %v1655_v19, 1  ;;  %v1678_v38 = vadd.f32 %v3691_v36, %v1676_v21  ;;  %v1799_v36 = vmul.f32 1.442695, %v1796_v53  ;;  %v4034_v53 = vld [vmem:[#allocation58_spill] sm:$0xff] }
 0x610   :  { %v1492_v48 = vrot.slane %v1491_v3, 2  ;;  %v1506_v56 = vpop.permute.xlu1 %1505 }
 0x611   :  { %v1657_v47 = vadd.f32 %v1656_v29, %v1655_v19  ;;  %v1679_v33 = vrot.slane %v1678_v38, 4  ;;  %v1512_v23 = vsel %vm717_vm5, %v4030_v9, %v1506_v56  ;;  %v2473_v42 = vpop.eup %2472  ;;  %2474 = vpow2.f32 %v1799_v36 }
 0x612   :  { %v1493_v55 = vadd.f32 %v1492_v48, %v1491_v3  ;;  %v1514_v34 = vmul.f32 %v1512_v23, %v3615_v17  ;;  %v1801_v0 = vadd.f32 1.0, %v2473_v42 }
 0x613   :  { %v1782_v20 = vsel %vm1770_vm8, %v1781_v14, %v1657_v47  ;;  %v1680_v54 = vadd.f32 %v1679_v33, %v1678_v38 }
 0x614   :  { %v1494_v1 = vrot.slane %v1493_v55, 1  ;;  %v1516_v63 = vadd.f32 %v3524_v43, %v1514_v34  ;;  %2476 = vrcp.f32 %v1801_v0  ;;  %v2488_v34 = vld [vmem:[%s3834_s1 + $0x150] sm:$0xff]  ;;  %s2531_s1 = smov 96  }
 0x615   :  { %v1681_v28 = vrot.slane %v1680_v54, 2  ;;  %v1695_v59 = vpop.permute.xlu1 %1694 }
 0x616   :  { %v1495_v31 = vadd.f32 %v1494_v1, %v1493_v55  ;;  %v1517_v16 = vrot.slane %v1516_v63, 4  ;;  %v1701_v58 = vsel %vm717_vm5, %v4031_v10, %v1695_v59 }
 0x617   :  { %v1682_v46 = vadd.f32 %v1681_v28, %v1680_v54  ;;  %v1703_v8 = vmul.f32 %v1701_v58, %v3606_v32 }
 0x618   :  { %v1518_v17 = vadd.f32 %v1517_v16, %v1516_v63  ;;  %v1775_v30 = vsel %vm1774_vm10, %v1773_v5, %v1495_v31 }
 0x619   :  { %v1683_v24 = vrot.slane %v1682_v46, 1  ;;  %v1705_v43 = vadd.f32 %v3697_v52, %v1703_v8 }
 0x61a   :  { %v1519_v51 = vrot.slane %v1518_v17, 2  ;;  %v1533_v6 = vpop.permute.xlu1 %1532 }
 0x61b   :  { %v1684_v13 = vadd.f32 %v1683_v24, %v1682_v46  ;;  %v1706_v57 = vrot.slane %v1705_v43, 4  ;;  %v1539_v14 = vsel %vm717_vm5, %v4032_v61, %v1533_v6  ;;  %v2475_v3 = vpop.eup %2474 }
 0x61c   :  { %v1520_v22 = vadd.f32 %v1519_v51, %v1518_v17  ;;  %v1541_v32 = vmul.f32 %v1539_v14, %v3637_v11  ;;  %v1802_v33 = vadd.f32 1.0, %v2475_v3  ;;  %v4036_v51 = vld [vmem:[#allocation7_spill] sm:$0xff]  ;;  %v1889_v14 = vrot.slane %v2488_v34, %v3184_v2 }
 0x61d   :  { %v1783_v35 = vsel %vm1772_vm9, %v1782_v20, %v1684_v13  ;;  %v1707_v44 = vadd.f32 %v1706_v57, %v1705_v43 }
 0x61e   :  { %v1521_v45 = vrot.slane %v1520_v22, 1  ;;  %v1543_v50 = vadd.f32 %v3541_v26, %v1541_v32  ;;  %v2477_v12 = vpop.eup %2476  ;;  %2478 = vrcp.f32 %v1802_v33 }
 0x61f   :  { %v1708_v60 = vrot.slane %v1707_v44, 2  ;;  %v1722_v52 = vpop.permute.xlu1 %1721  ;;  %v1807_v10 = vmul.f32 %v2477_v12, %v3752_v62 }
 0x620   :  { %v1522_v4 = vadd.f32 %v1521_v45, %v1520_v22  ;;  %v1544_v18 = vrot.slane %v1543_v50, 4  ;;  %v1728_v19 = vsel %vm717_vm5, %v4033_v27, %v1722_v52 }
 0x621   :  { %v1709_v21 = vadd.f32 %v1708_v60, %v1707_v44  ;;  %v1730_v49 = vmul.f32 %v1728_v19, %v3624_v39 }
 0x622   :  { %v1545_v11 = vadd.f32 %v1544_v18, %v1543_v50  ;;  %v1777_v7 = vsel %vm1776_vm11, %v1775_v30, %v1522_v4  ;;  %v2530_v50 = vmov 64  }
 0x623   :  { %v1710_v5 = vrot.slane %v1709_v21, 1  ;;  %v1732_v26 = vadd.f32 %v3703_v25, %v1730_v49  ;;  %v1790_v25 = vrot.slane %v2488_v34, %v3181_v15  ;;  %2391 = vset.pattern.permute.xlu1 %v2530_v50  ;;  %2390 = vset.pattern.permute.xlu0 %v2530_v50 }
 0x624   :  { %v1546_v29 = vrot.slane %v1545_v11, 2  ;;  %v1749_v38 = vpop.permute.xlu1 %1748 }
 0x625   :  { %v1711_v48 = vadd.f32 %v1710_v5, %v1709_v21  ;;  %v1733_v56 = vrot.slane %v1732_v26, 4  ;;  %v1755_v47 = vsel %vm717_vm5, %v4034_v53, %v1749_v38  ;;  %v1792_v6 = vmul.f32 %v1790_v25, %v4036_v51 }
 0x626   :  { %v1547_v9 = vadd.f32 %v1546_v29, %v1545_v11  ;;  %v1757_v23 = vmul.f32 %v1755_v47, %v3649_v40  ;;  %v4035_v40 = vld [vmem:[#allocation8_spill] sm:$0xff] }
 0x627   :  { %v1734_v39 = vadd.f32 %v1733_v56, %v1732_v26  ;;  %v1784_v55 = vsel %vm1774_vm10, %v1783_v35, %v1711_v48  ;;  %v1791_v59 = vmul.f32 %v1790_v25, %v4035_v40 }
 0x628   :  { %v1548_v20 = vrot.slane %v1547_v9, 1  ;;  %v1759_v54 = vadd.f32 %v3558_v37, %v1757_v23  ;;  %v2479_v24 = vpop.eup %2478 }
 0x629   :  { %v1735_v1 = vrot.slane %v1734_v39, 2  ;;  %v1808_v57 = vmul.f32 %v2479_v24, %v3770_v41 }
 0x62a   :  { %v1549_v63 = vadd.f32 %v1548_v20, %v1547_v9  ;;  %v1760_v36 = vrot.slane %v1759_v54, 4 }
 0x62b   :  { %v1736_v28 = vadd.f32 %v1735_v1, %v1734_v39 }
 0x62c   :  { %v1761_v31 = vadd.f32 %v1760_v36, %v1759_v54  ;;  %v1779_v16 = vsel %vm1778_vm12, %v1777_v7, %v1549_v63 }
 0x62d   :  { %v1737_v58 = vrot.slane %v1736_v28, 1  ;;  %v1793_v46 = vadd.f32 %v1791_v59, %v1779_v16 }
 0x62e   :  { %v1762_v15 = vrot.slane %v1761_v31, 2 }
 0x62f   :  { %v1738_v8 = vadd.f32 %v1737_v58, %v1736_v28  ;;  %v1809_v17 = vmul.f32 %v1807_v10, %v1793_v46 }
 0x630   :  { %v1763_v37 = vadd.f32 %v1762_v15, %v1761_v31 }
 0x631   :  { %v1785_v30 = vsel %vm1776_vm11, %v1784_v55, %v1738_v8  ;;  %2156 = vmatprep.mubr.f32.mxu1 %v1809_v17 }
 0x632   :  { %v1764_v42 = vrot.slane %v1763_v37, 1 }
 0x634   :  { %v1765_v43 = vadd.f32 %v1764_v42, %v1763_v37 }
 0x636   :  { %v1786_v13 = vsel %vm1778_vm12, %v1785_v30, %v1765_v43 }
 0x637   :  { %v1794_v61 = vadd.f32 %v1792_v6, %v1786_v13 }
 0x639   :  { %v1810_v62 = vmul.f32 %v1808_v57, %v1794_v61 }
 0x63b   :  { %2157 = vmatmul.mubr.f32.vlgmr.msra.gmra.mrb[10].mxu1 %v1810_v62 }
 0x70e   :  { %v2158_v0 = vpop.f32.mrb[10].mxu1 }
 0x70f   :  { %v1891_v22 = vmul.f32 %v2158_v0, %v1889_v14  ;;  %v1877_v32 = vpop.f32.mrb[11].mxu1 }
 0x710   :  { %v1890_v35 = vmul.f32 %v1889_v14, %v1877_v32 }
 0x711   :  { %v1895_v44 = vsel %vm323_vm2, %v1891_v22, 0.0 }
 0x712   :  { %1896 = vadd.xlane.f32.xlu0 %v1895_v44  ;;  %v1892_v45 = vsel %vm323_vm2, %v1890_v35, 0.0 }
 0x713   :  { %1893 = vadd.xlane.f32.xlu1 %v1892_v45 }
 0x79f   :  { %v1897_v60 = vpop.xlane.xlu0 %1896 }
 0x7a0   :  { %v1899_v41 = vadd.f32 %v1897_v60, %v1889_v14  ;;  %v1894_v52 = vpop.xlane.xlu1 %1893 }
 0x7a1   :  { %v1898_v4 = vadd.f32 %v1894_v52, %v1889_v14 }
 0x7a2   :  { %v1901_v18 = vsub.f32 0.0, %v1899_v41 }
 0x7a3   :  { %v1900_v27 = vsub.f32 0.0, %v1898_v4 }
 0x7a4   :  { %v1904_v2 = vmul.f32 1.442695, %v1901_v18 }
 0x7a5   :  { %v1902_v19 = vmul.f32 1.442695, %v1900_v27 }
 0x7a6   :  { %2480 = vpow2.f32 %v1904_v2 }
 0x7a7   :  { %2482 = vpow2.f32 %v1902_v19 }
 0x7b0   :  { %v2481_v21 = vpop.eup %2480 }
 0x7b1   :  { %v2483_v49 = vpop.eup %2482  ;;  %v1907_v11 = vadd.f32 1.0, %v2481_v21 }
 0x7b2   :  { %v1906_v7 = vadd.f32 1.0, %v2483_v49 }
 0x7b3   :  { %2484 = vrcp.f32 %v1907_v11 }
 0x7b4   :  { %2486 = vrcp.f32 %v1906_v7 }
 0x7bd   :  { %v2485_v3 = vpop.eup %2484 }
 0x7be   :  { %v2487_v5 = vpop.eup %2486  ;;  %v1925_v26 = vsub.f32 1.0, %v2485_v3 }
 0x7bf   :  { %v1924_v29 = vsub.f32 1.0, %v2487_v5 }
 0x7c0   :  { %1933 = vperm.xlu1 %2391, %v1925_v26  }
 0x7c1   :  { %1928 = vperm.xlu0 %2390, %v1924_v29  }
 0x7c4   :  { %1914 = vperm.xlu1 %2391, %v2487_v5  }
 0x7c8   :  { %1919 = vperm.xlu1 %2391, %v2485_v3  }
 0x83f   :  { %v1934_v56 = vpop.permute.xlu1 %1933 }
 0x840   :  { %v1929_v38 = vpop.permute.xlu0 %1928  ;;  %v1937_v53 = vmul.f32 %v2158_v0, %v1934_v56 }
 0x841   :  { %v1936_v48 = vmul.f32 %v1929_v38, %v1877_v32 }
 0x843   :  { %1940 = vrot.lane.b32.xlu1 %v1936_v48, %s2531_s1  ;;  %v1915_v47 = vpop.permute.xlu1 %1914 }
 0x844   :  { %v1922_v9 = vmul.f32 %v1915_v47, %v1877_v32 }
 0x847   :  { %1942 = vrot.lane.b32.xlu1 %v1937_v53, %s2531_s1  ;;  %v1920_v33 = vpop.permute.xlu1 %1919 }
 0x848   :  { %v1923_v55 = vmul.f32 %v2158_v0, %v1920_v33 }
 0x8b5   :  { %v1941_v23 = vpop.permute.xlu1 %1940 }
 0x8b6   :  { %v1946_v39 = vadd.f32 %v1941_v23, %v1922_v9 }
 0x8b8   :  { %1948 = vst.msk [vmem:[#allocation2] sm:$0xff] %vm70_vm0, %v1946_v39 }
 0x8b9   :  { %v1943_v34 = vpop.permute.xlu1 %1942 }
 0x8ba   :  { %v1947_v25 = vadd.f32 %v1943_v34, %v1923_v55 }
 0x8bc   :  { %1949 = vst.msk [vmem:[#allocation2 + $0x8] sm:$0xff] %vm70_vm0, %v1947_v25 }
 0x8bd   :  { %2500 = shalt.err (!%p2497_p4)
}
 0x8be   :  { %s2501_s15 = scalar_lea.hbm %s3836_s3, 256 }
 0x8bf   :  { %p2502_p5 = scmp.ne.s32.totalorder %s3836_s3, %s2501_s15  ;;  %p2505_p6 = scmp.lt.u32.totalorder %s2501_s15, %s3836_s3 }
 0x8c1   :  { %p2507_p7 = pnand %p2505_p6, %p2502_p5 }
 0x8c3   :  { %2510 = shalt.err (!%p2507_p7)
}
 0x8c4   :  { %s2533_s20 = smov 128   ;;  %s2534_s21 = smov 8  }
 0x8c5   :  { %1961 = dma.vmem_to_hbm [thread:$0]  %s1956_s11, 256, %s3836_s3, [#allocation3], %s2533_s20, %s2533_s20, %s2534_s21  }
 0x8c6   :  { %2511 = dma.done.wait [#allocation3], 256  }
 0x8c7   :  { %2512 = vsyncadd [#allocation3], 4294967040 }
 0x8c8   :  { %1965 = vsyncpa [#allocation3], 1 }

</bundles_post_ra>
